<compile_context>
chip_gen: v6e
topology: v6e:2x2x1
jax: 0.10.0
libtpu: 0.0.40
codegen_flags: <defaults>
</compile_context>

<pallas_src>
import functools

import numpy as np
import jax
import jax.numpy as jnp
from jax.experimental import pallas as pl
from jax.experimental.pallas import tpu as pltpu


def _conv_out(s):
    return (s - 3) // 2 + 1


# ----------------------------------------------------------------------------
# Fused per-sample kernel:
#   conv1+BN+ReLU -> conv2+BN+ReLU -> conv3+BN+ReLU -> fc1+ReLU -> [fc2 | value]
# ----------------------------------------------------------------------------
def _fused_kernel(p1_ref, w1_ref, s1_ref, t1_ref,
                  g2_ref, w2_ref, s2_ref, t2_ref,
                  w3_ref, s3_ref, t3_ref,
                  fc1w_ref, fc1b_ref, w2c_ref, b2c_ref,
                  out_ref):
    # ---- conv1 + BN + ReLU: one GEMM on wrapper-built im2col patches (49,36)x(36,32)
    z1 = jnp.dot(p1_ref[0], w1_ref[...], preferred_element_type=jnp.float32)     # (49, 32) f32
    a1 = jnp.maximum(z1 * s1_ref[...] + t1_ref[...], 0.0).astype(jnp.bfloat16)   # bf16 for MXU

    # ---- conv2 + BN + ReLU: per-sample row gather via precomputed bf16 one-hots
    r2 = g2_ref.shape[1]
    acc2 = jnp.zeros((r2, w2_ref.shape[2]), jnp.float32)                         # (9, 64)
    for t in range(9):                                        # static unroll over taps
        patch = jnp.dot(g2_ref[t], a1, preferred_element_type=jnp.float32)       # (9, 32) exact
        acc2 = acc2 + jnp.dot(patch.astype(jnp.bfloat16), w2_ref[t],
                              preferred_element_type=jnp.float32)
    a2 = jnp.maximum(acc2 * s2_ref[...] + t2_ref[...], 0.0).astype(jnp.bfloat16)  # (9, 64)

    # ---- conv3 + BN + ReLU: 3x3 input == kernel footprint -> 9 static-row dots
    acc3 = jnp.zeros((1, w3_ref.shape[2]), jnp.float32)                           # (1, 128)
    for t in range(9):
        acc3 = acc3 + jnp.dot(a2[t:t + 1, :], w3_ref[t],
                              preferred_element_type=jnp.float32)
    a3 = jnp.maximum(acc3 * s3_ref[...] + t3_ref[...], 0.0).astype(jnp.bfloat16)  # (1, 128)

    # ---- fc1 + ReLU, then fc2 and value_branch fused into one small padded slab
    h = jnp.maximum(jnp.dot(a3, fc1w_ref[...], preferred_element_type=jnp.float32)
                    + fc1b_ref[...], 0.0).astype(jnp.bfloat16)                    # (1, 256)
    out = jnp.dot(h, w2c_ref[...], preferred_element_type=jnp.float32) + b2c_ref[...]
    out_ref[0] = out.astype(out_ref.dtype)


def _const_spec(a):
    zeros = (0,) * a.ndim
    return pl.BlockSpec(a.shape, lambda b, _z=zeros: _z)   # fetched once, VMEM-resident


def racecar_fused_call(patches1, p):
    B = patches1.shape[0]
    npad = p["w2c"].shape[1]

    consts = (p["w1"], p["conv1_scale"], p["conv1_shift"],
              p["g2"], p["w2"], p["conv2_scale"], p["conv2_shift"],
              p["w3"], p["conv3_scale"], p["conv3_shift"],
              p["fc1_w"], p["fc1_b"], p["w2c"], p["b2c"])

    in_specs = [pl.BlockSpec((1,) + patches1.shape[1:], lambda b: (b, 0, 0))]
    in_specs += [_const_spec(a) for a in consts]

    # honest advisory cost estimate (real GEMM work only)
    r1, k1, c1 = patches1.shape[1], patches1.shape[2], p["w1"].shape[1]   # 49, 36, 32
    r2, rin2, c2 = p["g2"].shape[1], p["g2"].shape[2], p["w2"].shape[2]   # 9, 49, 64
    c3 = p["w3"].shape[2]                                                 # 128
    n_fc1 = p["fc1_w"].shape[1]                                           # 256
    flops_per_sample = (2 * r1 * k1 * c1
                        + 9 * 2 * r2 * rin2 * c1          # conv2 row gathers
                        + 9 * 2 * r2 * c1 * c2            # conv2 weight contraction
                        + 9 * 2 * 1 * c2 * c3             # conv3
                        + 2 * c3 * n_fc1                  # fc1
                        + 2 * n_fc1 * npad)               # fc2 | value
    operands = (patches1,) + consts
    bytes_acc = int(sum(a.size * a.dtype.itemsize for a in operands)) + B * npad * 4

    return pl.pallas_call(
        _fused_kernel,
        out_shape=jax.ShapeDtypeStruct((B, 1, npad), jnp.float32),
        grid=(B,),                                          # one sample per grid step
        in_specs=in_specs,
        out_specs=pl.BlockSpec((1, 1, npad), lambda b: (b, 0, 0)),
        compiler_params=pltpu.CompilerParams(dimension_semantics=("parallel",)),
        cost_estimate=pl.CostEstimate(flops=B * flops_per_sample, transcendentals=0,
                                      bytes_accessed=bytes_acc),
    )(patches1, *consts)


# ----------------------------------------------------------------------------
# Wrapper-side im2col for conv1 only (tiny; static strided slices, XLA fuses it)
# ----------------------------------------------------------------------------
def im2col_conv1(x_nhwc):
    B, H, W, F = x_nhwc.shape
    oh, ow = _conv_out(H), _conv_out(W)
    cols = []
    for kh in range(3):
        for kw in range(3):
            cols.append(x_nhwc[:, kh:kh + 2 * (oh - 1) + 1:2,
                               kw:kw + 2 * (ow - 1) + 1:2, :])
    patches = jnp.concatenate(cols, axis=-1)               # (B, oh, ow, 9*F), tap-major
    return patches.reshape(B, oh * ow, 9 * F).astype(jnp.bfloat16)


# ----------------------------------------------------------------------------
# Parameter / constant construction (deterministic, synthetic) — shapes mirror torch
# ----------------------------------------------------------------------------
def build_conv2_gather(ih, oh):
    """One-hot row selectors: S[t, o, r] = 1 iff input row r feeds output o at tap t."""
    s = np.zeros((9, oh * oh, ih * ih), np.float32)
    for kh in range(3):
        for kw in range(3):
            t = kh * 3 + kw
            for oy in range(oh):
                for ox in range(oh):
                    s[t, oy * oh + ox, (2 * oy + kh) * ih + (2 * ox + kw)] = 1.0
    return jnp.asarray(s, dtype=jnp.bfloat16)


def init_params(key, frame_num, num_outputs, hw):
    ks = jax.random.split(key, 18)
    nrm = lambda k, shape, s=0.05: (s * jax.random.normal(k, shape)).astype(jnp.float32)
    eps = 1e-5
    params = {}

    cins, couts = [frame_num, 32, 64], [32, 64, 128]
    s_in = hw
    for i, (ci, co) in enumerate(zip(cins, couts)):
        w = nrm(ks[4 * i + 0], (3, 3, ci, co))                   # HWIO
        b = nrm(ks[4 * i + 1], (co,))                            # conv bias
        gamma = (1.0 + 0.1 * jax.random.normal(ks[4 * i + 2], (co,))).astype(jnp.float32)
        beta = nrm(ks[4 * i + 3], (co,))
        run_mean = 0.01 * jnp.arange(co, dtype=jnp.float32)      # deterministic running stats
        run_var = 1.0 + 0.001 * jnp.arange(co, dtype=jnp.float32)
        scale = gamma / jnp.sqrt(run_var + eps)
        shift = (b - run_mean) * scale + beta                    # BN(conv(x)+b) = conv(x)*scale+shift
        params[f"conv{i + 1}_scale"] = scale.reshape(1, co)      # epilogues stay f32
        params[f"conv{i + 1}_shift"] = shift.reshape(1, co)
        if i == 0:
            params["w1"] = w.reshape(9 * ci, co).astype(jnp.bfloat16)   # (9*Cin, Cout), tap-major
        else:
            params[f"w{i + 1}"] = w.reshape(9, ci, co).astype(jnp.bfloat16)
        s_in = _conv_out(s_in)

    s1, s2, s3 = _conv_out(hw), _conv_out(_conv_out(hw)), _conv_out(_conv_out(_conv_out(hw)))
    assert s3 == 1 and s2 == 3, "fused fc head assumes 16x16 obs (conv3 input 3x3 -> 1x1)"
    params["g2"] = build_conv2_gather(s1, s2)                    # (9, 9, 49) bf16 one-hots

    conv_out_size = 128 * s3 * s3                                # = 128
    params["fc1_w"] = nrm(ks[12], (conv_out_size, 256)).astype(jnp.bfloat16)
    params["fc1_b"] = nrm(ks[13], (1, 256))
    fc2_w = nrm(ks[14], (256, num_outputs))
    fc2_b = nrm(ks[15], (1, num_outputs))
    v_w = nrm(ks[16], (256, 1))                                  # value_branch weight
    v_b = nrm(ks[17], (1, 1))

    npad = max(8, -(-(num_outputs + 1) // 8) * 8)                # small pad, not 128 (HBM saving)
    w2c = jnp.zeros((256, npad), jnp.float32)
    w2c = w2c.at[:, :num_outputs].set(fc2_w)
    w2c = w2c.at[:, num_outputs:num_outputs + 1].set(v_w)
    b2c = jnp.zeros((1, npad), jnp.float32)
    b2c = b2c.at[:, :num_outputs].set(fc2_b)
    b2c = b2c.at[:, num_outputs:num_outputs + 1].set(v_b)
    params["w2c"] = w2c.astype(jnp.bfloat16)
    params["b2c"] = b2c
    return params


# ----------------------------------------------------------------------------
# Forward pass (mirrors RacecarCNN.forward)
# ----------------------------------------------------------------------------
def racecar_forward(params, obs, num_outputs):
    B, F, H, W, _ = obs.shape
    x = jnp.transpose(jnp.squeeze(obs, axis=-1), (0, 2, 3, 1))   # squeeze(-1) -> NHWC
    patches1 = im2col_conv1(x)                                   # (B, 49, 9*F) bf16
    out = racecar_fused_call(patches1, params).reshape(B, -1)    # (B, npad)
    logits = out[:, :num_outputs]
    value = out[:, num_outputs:num_outputs + 1]
    return logits, value                                         # value_function() = value.squeeze(-1)


# ----------------------------------------------------------------------------
# Pure-JAX reference (same folded params / bf16-rounded weights, f32 math)
# ----------------------------------------------------------------------------
def reference_forward(params, obs, num_outputs):
    x = jnp.transpose(jnp.squeeze(obs, axis=-1), (0, 2, 3, 1))   # NHWC
    ws = [params["w1"].astype(jnp.float32).reshape(3, 3, -1, 32),
          params["w2"].astype(jnp.float32).reshape(3, 3, 32, 64),
          params["w3"].astype(jnp.float32).reshape(3, 3, 64, 128)]
    for i, w4 in enumerate(ws, start=1):
        co = w4.shape[3]
        x = jax.lax.conv_general_dilated(
            x, w4, window_strides=(2, 2), padding="VALID",
            dimension_numbers=("NHWC", "HWIO", "NHWC"))
        x = jnp.maximum(x * params[f"conv{i}_scale"].reshape(1, 1, 1, co)
                        + params[f"conv{i}_shift"].reshape(1, 1, 1, co), 0.0)
    feat = x.reshape(x.shape[0], -1)                             # 1x1 spatial
    h = jnp.maximum(feat @ params["fc1_w"].astype(jnp.float32) + params["fc1_b"], 0.0)
    out = h @ params["w2c"].astype(jnp.float32) + params["b2c"]
    return out[:, :num_outputs], out[:, num_outputs:num_outputs + 1]


if __name__ == "__main__":
    key = jax.random.PRNGKey(0)
    B, FRAMES, H, W = 2, 4, 16, 16
    NUM_OUTPUTS = 2

    k_obs, k_par = jax.random.split(key)
    obs = jax.random.uniform(k_obs, (B, FRAMES, H, W, 1), dtype=jnp.float32)
    params = init_params(k_par, FRAMES, NUM_OUTPUTS, hw=H)

    fwd = jax.jit(functools.partial(racecar_forward, params, num_outputs=NUM_OUTPUTS))
    logits, value = fwd(obs)
    jax.block_until_ready((logits, value))

    assert logits.shape == (B, NUM_OUTPUTS), logits.shape
    assert value.shape == (B, 1), value.shape
    _ = value.squeeze(-1)  # value_function()

    # correctness check against a pure-JAX reference (tolerance reflects bf16 matmul operands)
    ref_logits, ref_value = jax.jit(
        functools.partial(reference_forward, params, num_outputs=NUM_OUTPUTS))(obs)
    np.testing.assert_allclose(np.asarray(logits), np.asarray(ref_logits), rtol=2e-2, atol=2e-2)
    np.testing.assert_allclose(np.asarray(value), np.asarray(ref_value), rtol=2e-2, atol=2e-2)

    print("KERNEL_OK")
</pallas_src>

<mosaic_0001>
module attributes {stable_mosaic.version = 11 : i64} {
  func.func @_fused_kernel(%arg0: i32, %arg1: memref<1x49x36xbf16, #tpu.memory_space<vmem>>, %arg2: memref<36x32xbf16, #tpu.memory_space<vmem>>, %arg3: memref<1x32xf32, #tpu.memory_space<vmem>>, %arg4: memref<1x32xf32, #tpu.memory_space<vmem>>, %arg5: memref<9x9x49xbf16, #tpu.memory_space<vmem>>, %arg6: memref<9x32x64xbf16, #tpu.memory_space<vmem>>, %arg7: memref<1x64xf32, #tpu.memory_space<vmem>>, %arg8: memref<1x64xf32, #tpu.memory_space<vmem>>, %arg9: memref<9x64x128xbf16, #tpu.memory_space<vmem>>, %arg10: memref<1x128xf32, #tpu.memory_space<vmem>>, %arg11: memref<1x128xf32, #tpu.memory_space<vmem>>, %arg12: memref<128x256xbf16, #tpu.memory_space<vmem>>, %arg13: memref<1x256xf32, #tpu.memory_space<vmem>>, %arg14: memref<256x8xbf16, #tpu.memory_space<vmem>>, %arg15: memref<1x8xf32, #tpu.memory_space<vmem>>, %arg16: memref<1x1x8xf32, #tpu.memory_space<vmem>>) attributes {dimension_semantics = [#tpu.dimension_semantics<parallel>], iteration_bounds = array<i64: 2>, scalar_prefetch = 0 : i64, scratch_operands = 0 : i64, tpu.core_type = #tpu.core_type<tc>, window_params = [{transform_indices = @transform_0, window_bounds = array<i64: 1, 49, 36>}, {pipeline_mode = #tpu.pipeline_mode<synchronous>, transform_indices = @transform_1, window_bounds = array<i64: 36, 32>}, {pipeline_mode = #tpu.pipeline_mode<synchronous>, transform_indices = @transform_2, window_bounds = array<i64: 1, 32>}, {pipeline_mode = #tpu.pipeline_mode<synchronous>, transform_indices = @transform_3, window_bounds = array<i64: 1, 32>}, {pipeline_mode = #tpu.pipeline_mode<synchronous>, transform_indices = @transform_4, window_bounds = array<i64: 9, 9, 49>}, {pipeline_mode = #tpu.pipeline_mode<synchronous>, transform_indices = @transform_5, window_bounds = array<i64: 9, 32, 64>}, {pipeline_mode = #tpu.pipeline_mode<synchronous>, transform_indices = @transform_6, window_bounds = array<i64: 1, 64>}, {pipeline_mode = #tpu.pipeline_mode<synchronous>, transform_indices = @transform_7, window_bounds = array<i64: 1, 64>}, {pipeline_mode = #tpu.pipeline_mode<synchronous>, transform_indices = @transform_8, window_bounds = array<i64: 9, 64, 128>}, {pipeline_mode = #tpu.pipeline_mode<synchronous>, transform_indices = @transform_9, window_bounds = array<i64: 1, 128>}, {pipeline_mode = #tpu.pipeline_mode<synchronous>, transform_indices = @transform_10, window_bounds = array<i64: 1, 128>}, {pipeline_mode = #tpu.pipeline_mode<synchronous>, transform_indices = @transform_11, window_bounds = array<i64: 128, 256>}, {pipeline_mode = #tpu.pipeline_mode<synchronous>, transform_indices = @transform_12, window_bounds = array<i64: 1, 256>}, {pipeline_mode = #tpu.pipeline_mode<synchronous>, transform_indices = @transform_13, window_bounds = array<i64: 256, 8>}, {pipeline_mode = #tpu.pipeline_mode<synchronous>, transform_indices = @transform_14, window_bounds = array<i64: 1, 8>}, {transform_indices = @transform_15, window_bounds = array<i64: 1, 1, 8>}]} {
    %c0 = arith.constant 0 : index
    %c0_0 = arith.constant 0 : index
    %c0_1 = arith.constant 0 : index
    %0 = vector.load %arg1[%c0, %c0_0, %c0_1] : memref<1x49x36xbf16, #tpu.memory_space<vmem>>, vector<1x49x36xbf16>
    %1 = vector.shape_cast %0 : vector<1x49x36xbf16> to vector<49x36xbf16>
    %c0_2 = arith.constant 0 : index
    %c0_3 = arith.constant 0 : index
    %2 = vector.load %arg2[%c0_2, %c0_3] : memref<36x32xbf16, #tpu.memory_space<vmem>>, vector<36x32xbf16>
    %cst = arith.constant dense<0.000000e+00> : vector<49x32xf32>
    %3 = tpu.matmul %1, %2, %cst {dimension_numbers = #tpu.dot_dimension_numbers<[1], [0], [0], [1], [0, 0, 1, 1], [], []>} : vector<49x36xbf16>, vector<36x32xbf16>, vector<49x32xf32> -> vector<49x32xf32>
    %c0_4 = arith.constant 0 : index
    %c0_5 = arith.constant 0 : index
    %4 = vector.load %arg3[%c0_4, %c0_5] : memref<1x32xf32, #tpu.memory_space<vmem>>, vector<1x32xf32>
    %5 = vector.broadcast %4 : vector<1x32xf32> to vector<49x32xf32>
    %6 = arith.mulf %3, %5 : vector<49x32xf32>
    %c0_6 = arith.constant 0 : index
    %c0_7 = arith.constant 0 : index
    %7 = vector.load %arg4[%c0_6, %c0_7] : memref<1x32xf32, #tpu.memory_space<vmem>>, vector<1x32xf32>
    %8 = vector.broadcast %7 : vector<1x32xf32> to vector<49x32xf32>
    %9 = arith.addf %6, %8 : vector<49x32xf32>
    %cst_8 = arith.constant 0.000000e+00 : f32
    %10 = vector.broadcast %cst_8 : f32 to vector<49x32xf32>
    %11 = arith.maximumf %9, %10 : vector<49x32xf32>
    %12 = arith.truncf %11 : vector<49x32xf32> to vector<49x32xbf16>
    %cst_9 = arith.constant 0.000000e+00 : f32
    %13 = vector.broadcast %cst_9 : f32 to vector<9x64xf32>
    %c0_10 = arith.constant 0 : index
    %c0_11 = arith.constant 0 : index
    %c0_12 = arith.constant 0 : index
    %14 = vector.load %arg5[%c0_10, %c0_11, %c0_12] : memref<9x9x49xbf16, #tpu.memory_space<vmem>>, vector<1x9x49xbf16>
    %15 = vector.shape_cast %14 : vector<1x9x49xbf16> to vector<9x49xbf16>
    %cst_13 = arith.constant dense<0.000000e+00> : vector<9x32xf32>
    %16 = tpu.matmul %15, %12, %cst_13 {dimension_numbers = #tpu.dot_dimension_numbers<[1], [0], [0], [1], [0, 0, 1, 1], [], []>} : vector<9x49xbf16>, vector<49x32xbf16>, vector<9x32xf32> -> vector<9x32xf32>
    %17 = arith.truncf %16 : vector<9x32xf32> to vector<9x32xbf16>
    %c0_14 = arith.constant 0 : index
    %c0_15 = arith.constant 0 : index
    %c0_16 = arith.constant 0 : index
    %18 = vector.load %arg6[%c0_14, %c0_15, %c0_16] : memref<9x32x64xbf16, #tpu.memory_space<vmem>>, vector<1x32x64xbf16>
    %19 = vector.shape_cast %18 : vector<1x32x64xbf16> to vector<32x64xbf16>
    %cst_17 = arith.constant dense<0.000000e+00> : vector<9x64xf32>
    %20 = tpu.matmul %17, %19, %cst_17 {dimension_numbers = #tpu.dot_dimension_numbers<[1], [0], [0], [1], [0, 0, 1, 1], [], []>} : vector<9x32xbf16>, vector<32x64xbf16>, vector<9x64xf32> -> vector<9x64xf32>
    %21 = arith.addf %13, %20 : vector<9x64xf32>
    %c1 = arith.constant 1 : index
    %c0_18 = arith.constant 0 : index
    %c0_19 = arith.constant 0 : index
    %22 = vector.load %arg5[%c1, %c0_18, %c0_19] : memref<9x9x49xbf16, #tpu.memory_space<vmem>>, vector<1x9x49xbf16>
    %23 = vector.shape_cast %22 : vector<1x9x49xbf16> to vector<9x49xbf16>
    %cst_20 = arith.constant dense<0.000000e+00> : vector<9x32xf32>
    %24 = tpu.matmul %23, %12, %cst_20 {dimension_numbers = #tpu.dot_dimension_numbers<[1], [0], [0], [1], [0, 0, 1, 1], [], []>} : vector<9x49xbf16>, vector<49x32xbf16>, vector<9x32xf32> -> vector<9x32xf32>
    %25 = arith.truncf %24 : vector<9x32xf32> to vector<9x32xbf16>
    %c1_21 = arith.constant 1 : index
    %c0_22 = arith.constant 0 : index
    %c0_23 = arith.constant 0 : index
    %26 = vector.load %arg6[%c1_21, %c0_22, %c0_23] : memref<9x32x64xbf16, #tpu.memory_space<vmem>>, vector<1x32x64xbf16>
    %27 = vector.shape_cast %26 : vector<1x32x64xbf16> to vector<32x64xbf16>
    %cst_24 = arith.constant dense<0.000000e+00> : vector<9x64xf32>
    %28 = tpu.matmul %25, %27, %cst_24 {dimension_numbers = #tpu.dot_dimension_numbers<[1], [0], [0], [1], [0, 0, 1, 1], [], []>} : vector<9x32xbf16>, vector<32x64xbf16>, vector<9x64xf32> -> vector<9x64xf32>
    %29 = arith.addf %21, %28 : vector<9x64xf32>
    %c2 = arith.constant 2 : index
    %c0_25 = arith.constant 0 : index
    %c0_26 = arith.constant 0 : index
    %30 = vector.load %arg5[%c2, %c0_25, %c0_26] : memref<9x9x49xbf16, #tpu.memory_space<vmem>>, vector<1x9x49xbf16>
    %31 = vector.shape_cast %30 : vector<1x9x49xbf16> to vector<9x49xbf16>
    %cst_27 = arith.constant dense<0.000000e+00> : vector<9x32xf32>
    %32 = tpu.matmul %31, %12, %cst_27 {dimension_numbers = #tpu.dot_dimension_numbers<[1], [0], [0], [1], [0, 0, 1, 1], [], []>} : vector<9x49xbf16>, vector<49x32xbf16>, vector<9x32xf32> -> vector<9x32xf32>
    %33 = arith.truncf %32 : vector<9x32xf32> to vector<9x32xbf16>
    %c2_28 = arith.constant 2 : index
    %c0_29 = arith.constant 0 : index
    %c0_30 = arith.constant 0 : index
    %34 = vector.load %arg6[%c2_28, %c0_29, %c0_30] : memref<9x32x64xbf16, #tpu.memory_space<vmem>>, vector<1x32x64xbf16>
    %35 = vector.shape_cast %34 : vector<1x32x64xbf16> to vector<32x64xbf16>
    %cst_31 = arith.constant dense<0.000000e+00> : vector<9x64xf32>
    %36 = tpu.matmul %33, %35, %cst_31 {dimension_numbers = #tpu.dot_dimension_numbers<[1], [0], [0], [1], [0, 0, 1, 1], [], []>} : vector<9x32xbf16>, vector<32x64xbf16>, vector<9x64xf32> -> vector<9x64xf32>
    %37 = arith.addf %29, %36 : vector<9x64xf32>
    %c3 = arith.constant 3 : index
    %c0_32 = arith.constant 0 : index
    %c0_33 = arith.constant 0 : index
    %38 = vector.load %arg5[%c3, %c0_32, %c0_33] : memref<9x9x49xbf16, #tpu.memory_space<vmem>>, vector<1x9x49xbf16>
    %39 = vector.shape_cast %38 : vector<1x9x49xbf16> to vector<9x49xbf16>
    %cst_34 = arith.constant dense<0.000000e+00> : vector<9x32xf32>
    %40 = tpu.matmul %39, %12, %cst_34 {dimension_numbers = #tpu.dot_dimension_numbers<[1], [0], [0], [1], [0, 0, 1, 1], [], []>} : vector<9x49xbf16>, vector<49x32xbf16>, vector<9x32xf32> -> vector<9x32xf32>
    %41 = arith.truncf %40 : vector<9x32xf32> to vector<9x32xbf16>
    %c3_35 = arith.constant 3 : index
    %c0_36 = arith.constant 0 : index
    %c0_37 = arith.constant 0 : index
    %42 = vector.load %arg6[%c3_35, %c0_36, %c0_37] : memref<9x32x64xbf16, #tpu.memory_space<vmem>>, vector<1x32x64xbf16>
    %43 = vector.shape_cast %42 : vector<1x32x64xbf16> to vector<32x64xbf16>
    %cst_38 = arith.constant dense<0.000000e+00> : vector<9x64xf32>
    %44 = tpu.matmul %41, %43, %cst_38 {dimension_numbers = #tpu.dot_dimension_numbers<[1], [0], [0], [1], [0, 0, 1, 1], [], []>} : vector<9x32xbf16>, vector<32x64xbf16>, vector<9x64xf32> -> vector<9x64xf32>
    %45 = arith.addf %37, %44 : vector<9x64xf32>
    %c4 = arith.constant 4 : index
    %c0_39 = arith.constant 0 : index
    %c0_40 = arith.constant 0 : index
    %46 = vector.load %arg5[%c4, %c0_39, %c0_40] : memref<9x9x49xbf16, #tpu.memory_space<vmem>>, vector<1x9x49xbf16>
    %47 = vector.shape_cast %46 : vector<1x9x49xbf16> to vector<9x49xbf16>
    %cst_41 = arith.constant dense<0.000000e+00> : vector<9x32xf32>
    %48 = tpu.matmul %47, %12, %cst_41 {dimension_numbers = #tpu.dot_dimension_numbers<[1], [0], [0], [1], [0, 0, 1, 1], [], []>} : vector<9x49xbf16>, vector<49x32xbf16>, vector<9x32xf32> -> vector<9x32xf32>
    %49 = arith.truncf %48 : vector<9x32xf32> to vector<9x32xbf16>
    %c4_42 = arith.constant 4 : index
    %c0_43 = arith.constant 0 : index
    %c0_44 = arith.constant 0 : index
    %50 = vector.load %arg6[%c4_42, %c0_43, %c0_44] : memref<9x32x64xbf16, #tpu.memory_space<vmem>>, vector<1x32x64xbf16>
    %51 = vector.shape_cast %50 : vector<1x32x64xbf16> to vector<32x64xbf16>
    %cst_45 = arith.constant dense<0.000000e+00> : vector<9x64xf32>
    %52 = tpu.matmul %49, %51, %cst_45 {dimension_numbers = #tpu.dot_dimension_numbers<[1], [0], [0], [1], [0, 0, 1, 1], [], []>} : vector<9x32xbf16>, vector<32x64xbf16>, vector<9x64xf32> -> vector<9x64xf32>
    %53 = arith.addf %45, %52 : vector<9x64xf32>
    %c5 = arith.constant 5 : index
    %c0_46 = arith.constant 0 : index
    %c0_47 = arith.constant 0 : index
    %54 = vector.load %arg5[%c5, %c0_46, %c0_47] : memref<9x9x49xbf16, #tpu.memory_space<vmem>>, vector<1x9x49xbf16>
    %55 = vector.shape_cast %54 : vector<1x9x49xbf16> to vector<9x49xbf16>
    %cst_48 = arith.constant dense<0.000000e+00> : vector<9x32xf32>
    %56 = tpu.matmul %55, %12, %cst_48 {dimension_numbers = #tpu.dot_dimension_numbers<[1], [0], [0], [1], [0, 0, 1, 1], [], []>} : vector<9x49xbf16>, vector<49x32xbf16>, vector<9x32xf32> -> vector<9x32xf32>
    %57 = arith.truncf %56 : vector<9x32xf32> to vector<9x32xbf16>
    %c5_49 = arith.constant 5 : index
    %c0_50 = arith.constant 0 : index
    %c0_51 = arith.constant 0 : index
    %58 = vector.load %arg6[%c5_49, %c0_50, %c0_51] : memref<9x32x64xbf16, #tpu.memory_space<vmem>>, vector<1x32x64xbf16>
    %59 = vector.shape_cast %58 : vector<1x32x64xbf16> to vector<32x64xbf16>
    %cst_52 = arith.constant dense<0.000000e+00> : vector<9x64xf32>
    %60 = tpu.matmul %57, %59, %cst_52 {dimension_numbers = #tpu.dot_dimension_numbers<[1], [0], [0], [1], [0, 0, 1, 1], [], []>} : vector<9x32xbf16>, vector<32x64xbf16>, vector<9x64xf32> -> vector<9x64xf32>
    %61 = arith.addf %53, %60 : vector<9x64xf32>
    %c6 = arith.constant 6 : index
    %c0_53 = arith.constant 0 : index
    %c0_54 = arith.constant 0 : index
    %62 = vector.load %arg5[%c6, %c0_53, %c0_54] : memref<9x9x49xbf16, #tpu.memory_space<vmem>>, vector<1x9x49xbf16>
    %63 = vector.shape_cast %62 : vector<1x9x49xbf16> to vector<9x49xbf16>
    %cst_55 = arith.constant dense<0.000000e+00> : vector<9x32xf32>
    %64 = tpu.matmul %63, %12, %cst_55 {dimension_numbers = #tpu.dot_dimension_numbers<[1], [0], [0], [1], [0, 0, 1, 1], [], []>} : vector<9x49xbf16>, vector<49x32xbf16>, vector<9x32xf32> -> vector<9x32xf32>
    %65 = arith.truncf %64 : vector<9x32xf32> to vector<9x32xbf16>
    %c6_56 = arith.constant 6 : index
    %c0_57 = arith.constant 0 : index
    %c0_58 = arith.constant 0 : index
    %66 = vector.load %arg6[%c6_56, %c0_57, %c0_58] : memref<9x32x64xbf16, #tpu.memory_space<vmem>>, vector<1x32x64xbf16>
    %67 = vector.shape_cast %66 : vector<1x32x64xbf16> to vector<32x64xbf16>
    %cst_59 = arith.constant dense<0.000000e+00> : vector<9x64xf32>
    %68 = tpu.matmul %65, %67, %cst_59 {dimension_numbers = #tpu.dot_dimension_numbers<[1], [0], [0], [1], [0, 0, 1, 1], [], []>} : vector<9x32xbf16>, vector<32x64xbf16>, vector<9x64xf32> -> vector<9x64xf32>
    %69 = arith.addf %61, %68 : vector<9x64xf32>
    %c7 = arith.constant 7 : index
    %c0_60 = arith.constant 0 : index
    %c0_61 = arith.constant 0 : index
    %70 = vector.load %arg5[%c7, %c0_60, %c0_61] : memref<9x9x49xbf16, #tpu.memory_space<vmem>>, vector<1x9x49xbf16>
    %71 = vector.shape_cast %70 : vector<1x9x49xbf16> to vector<9x49xbf16>
    %cst_62 = arith.constant dense<0.000000e+00> : vector<9x32xf32>
    %72 = tpu.matmul %71, %12, %cst_62 {dimension_numbers = #tpu.dot_dimension_numbers<[1], [0], [0], [1], [0, 0, 1, 1], [], []>} : vector<9x49xbf16>, vector<49x32xbf16>, vector<9x32xf32> -> vector<9x32xf32>
    %73 = arith.truncf %72 : vector<9x32xf32> to vector<9x32xbf16>
    %c7_63 = arith.constant 7 : index
    %c0_64 = arith.constant 0 : index
    %c0_65 = arith.constant 0 : index
    %74 = vector.load %arg6[%c7_63, %c0_64, %c0_65] : memref<9x32x64xbf16, #tpu.memory_space<vmem>>, vector<1x32x64xbf16>
    %75 = vector.shape_cast %74 : vector<1x32x64xbf16> to vector<32x64xbf16>
    %cst_66 = arith.constant dense<0.000000e+00> : vector<9x64xf32>
    %76 = tpu.matmul %73, %75, %cst_66 {dimension_numbers = #tpu.dot_dimension_numbers<[1], [0], [0], [1], [0, 0, 1, 1], [], []>} : vector<9x32xbf16>, vector<32x64xbf16>, vector<9x64xf32> -> vector<9x64xf32>
    %77 = arith.addf %69, %76 : vector<9x64xf32>
    %c8 = arith.constant 8 : index
    %c0_67 = arith.constant 0 : index
    %c0_68 = arith.constant 0 : index
    %78 = vector.load %arg5[%c8, %c0_67, %c0_68] : memref<9x9x49xbf16, #tpu.memory_space<vmem>>, vector<1x9x49xbf16>
    %79 = vector.shape_cast %78 : vector<1x9x49xbf16> to vector<9x49xbf16>
    %cst_69 = arith.constant dense<0.000000e+00> : vector<9x32xf32>
    %80 = tpu.matmul %79, %12, %cst_69 {dimension_numbers = #tpu.dot_dimension_numbers<[1], [0], [0], [1], [0, 0, 1, 1], [], []>} : vector<9x49xbf16>, vector<49x32xbf16>, vector<9x32xf32> -> vector<9x32xf32>
    %81 = arith.truncf %80 : vector<9x32xf32> to vector<9x32xbf16>
    %c8_70 = arith.constant 8 : index
    %c0_71 = arith.constant 0 : index
    %c0_72 = arith.constant 0 : index
    %82 = vector.load %arg6[%c8_70, %c0_71, %c0_72] : memref<9x32x64xbf16, #tpu.memory_space<vmem>>, vector<1x32x64xbf16>
    %83 = vector.shape_cast %82 : vector<1x32x64xbf16> to vector<32x64xbf16>
    %cst_73 = arith.constant dense<0.000000e+00> : vector<9x64xf32>
    %84 = tpu.matmul %81, %83, %cst_73 {dimension_numbers = #tpu.dot_dimension_numbers<[1], [0], [0], [1], [0, 0, 1, 1], [], []>} : vector<9x32xbf16>, vector<32x64xbf16>, vector<9x64xf32> -> vector<9x64xf32>
    %85 = arith.addf %77, %84 : vector<9x64xf32>
    %c0_74 = arith.constant 0 : index
    %c0_75 = arith.constant 0 : index
    %86 = vector.load %arg7[%c0_74, %c0_75] : memref<1x64xf32, #tpu.memory_space<vmem>>, vector<1x64xf32>
    %87 = vector.broadcast %86 : vector<1x64xf32> to vector<9x64xf32>
    %88 = arith.mulf %85, %87 : vector<9x64xf32>
    %c0_76 = arith.constant 0 : index
    %c0_77 = arith.constant 0 : index
    %89 = vector.load %arg8[%c0_76, %c0_77] : memref<1x64xf32, #tpu.memory_space<vmem>>, vector<1x64xf32>
    %90 = vector.broadcast %89 : vector<1x64xf32> to vector<9x64xf32>
    %91 = arith.addf %88, %90 : vector<9x64xf32>
    %cst_78 = arith.constant 0.000000e+00 : f32
    %92 = vector.broadcast %cst_78 : f32 to vector<9x64xf32>
    %93 = arith.maximumf %91, %92 : vector<9x64xf32>
    %94 = arith.truncf %93 : vector<9x64xf32> to vector<9x64xbf16>
    %cst_79 = arith.constant 0.000000e+00 : f32
    %95 = vector.broadcast %cst_79 : f32 to vector<1x128xf32>
    %96 = vector.extract_strided_slice %94 {offsets = [0, 0], sizes = [1, 64], strides = [1, 1]} : vector<9x64xbf16> to vector<1x64xbf16>
    %c0_80 = arith.constant 0 : index
    %c0_81 = arith.constant 0 : index
    %c0_82 = arith.constant 0 : index
    %97 = vector.load %arg9[%c0_80, %c0_81, %c0_82] : memref<9x64x128xbf16, #tpu.memory_space<vmem>>, vector<1x64x128xbf16>
    %98 = vector.shape_cast %97 : vector<1x64x128xbf16> to vector<64x128xbf16>
    %cst_83 = arith.constant dense<0.000000e+00> : vector<1x128xf32>
    %99 = tpu.matmul %96, %98, %cst_83 {dimension_numbers = #tpu.dot_dimension_numbers<[1], [0], [0], [1], [0, 0, 1, 1], [], []>} : vector<1x64xbf16>, vector<64x128xbf16>, vector<1x128xf32> -> vector<1x128xf32>
    %100 = arith.addf %95, %99 : vector<1x128xf32>
    %101 = vector.extract_strided_slice %94 {offsets = [1, 0], sizes = [1, 64], strides = [1, 1]} : vector<9x64xbf16> to vector<1x64xbf16>
    %c1_84 = arith.constant 1 : index
    %c0_85 = arith.constant 0 : index
    %c0_86 = arith.constant 0 : index
    %102 = vector.load %arg9[%c1_84, %c0_85, %c0_86] : memref<9x64x128xbf16, #tpu.memory_space<vmem>>, vector<1x64x128xbf16>
    %103 = vector.shape_cast %102 : vector<1x64x128xbf16> to vector<64x128xbf16>
    %cst_87 = arith.constant dense<0.000000e+00> : vector<1x128xf32>
    %104 = tpu.matmul %101, %103, %cst_87 {dimension_numbers = #tpu.dot_dimension_numbers<[1], [0], [0], [1], [0, 0, 1, 1], [], []>} : vector<1x64xbf16>, vector<64x128xbf16>, vector<1x128xf32> -> vector<1x128xf32>
    %105 = arith.addf %100, %104 : vector<1x128xf32>
    %106 = vector.extract_strided_slice %94 {offsets = [2, 0], sizes = [1, 64], strides = [1, 1]} : vector<9x64xbf16> to vector<1x64xbf16>
    %c2_88 = arith.constant 2 : index
    %c0_89 = arith.constant 0 : index
    %c0_90 = arith.constant 0 : index
    %107 = vector.load %arg9[%c2_88, %c0_89, %c0_90] : memref<9x64x128xbf16, #tpu.memory_space<vmem>>, vector<1x64x128xbf16>
    %108 = vector.shape_cast %107 : vector<1x64x128xbf16> to vector<64x128xbf16>
    %cst_91 = arith.constant dense<0.000000e+00> : vector<1x128xf32>
    %109 = tpu.matmul %106, %108, %cst_91 {dimension_numbers = #tpu.dot_dimension_numbers<[1], [0], [0], [1], [0, 0, 1, 1], [], []>} : vector<1x64xbf16>, vector<64x128xbf16>, vector<1x128xf32> -> vector<1x128xf32>
    %110 = arith.addf %105, %109 : vector<1x128xf32>
    %111 = vector.extract_strided_slice %94 {offsets = [3, 0], sizes = [1, 64], strides = [1, 1]} : vector<9x64xbf16> to vector<1x64xbf16>
    %c3_92 = arith.constant 3 : index
    %c0_93 = arith.constant 0 : index
    %c0_94 = arith.constant 0 : index
    %112 = vector.load %arg9[%c3_92, %c0_93, %c0_94] : memref<9x64x128xbf16, #tpu.memory_space<vmem>>, vector<1x64x128xbf16>
    %113 = vector.shape_cast %112 : vector<1x64x128xbf16> to vector<64x128xbf16>
    %cst_95 = arith.constant dense<0.000000e+00> : vector<1x128xf32>
    %114 = tpu.matmul %111, %113, %cst_95 {dimension_numbers = #tpu.dot_dimension_numbers<[1], [0], [0], [1], [0, 0, 1, 1], [], []>} : vector<1x64xbf16>, vector<64x128xbf16>, vector<1x128xf32> -> vector<1x128xf32>
    %115 = arith.addf %110, %114 : vector<1x128xf32>
    %116 = vector.extract_strided_slice %94 {offsets = [4, 0], sizes = [1, 64], strides = [1, 1]} : vector<9x64xbf16> to vector<1x64xbf16>
    %c4_96 = arith.constant 4 : index
    %c0_97 = arith.constant 0 : index
    %c0_98 = arith.constant 0 : index
    %117 = vector.load %arg9[%c4_96, %c0_97, %c0_98] : memref<9x64x128xbf16, #tpu.memory_space<vmem>>, vector<1x64x128xbf16>
    %118 = vector.shape_cast %117 : vector<1x64x128xbf16> to vector<64x128xbf16>
    %cst_99 = arith.constant dense<0.000000e+00> : vector<1x128xf32>
    %119 = tpu.matmul %116, %118, %cst_99 {dimension_numbers = #tpu.dot_dimension_numbers<[1], [0], [0], [1], [0, 0, 1, 1], [], []>} : vector<1x64xbf16>, vector<64x128xbf16>, vector<1x128xf32> -> vector<1x128xf32>
    %120 = arith.addf %115, %119 : vector<1x128xf32>
    %121 = vector.extract_strided_slice %94 {offsets = [5, 0], sizes = [1, 64], strides = [1, 1]} : vector<9x64xbf16> to vector<1x64xbf16>
    %c5_100 = arith.constant 5 : index
    %c0_101 = arith.constant 0 : index
    %c0_102 = arith.constant 0 : index
    %122 = vector.load %arg9[%c5_100, %c0_101, %c0_102] : memref<9x64x128xbf16, #tpu.memory_space<vmem>>, vector<1x64x128xbf16>
    %123 = vector.shape_cast %122 : vector<1x64x128xbf16> to vector<64x128xbf16>
    %cst_103 = arith.constant dense<0.000000e+00> : vector<1x128xf32>
    %124 = tpu.matmul %121, %123, %cst_103 {dimension_numbers = #tpu.dot_dimension_numbers<[1], [0], [0], [1], [0, 0, 1, 1], [], []>} : vector<1x64xbf16>, vector<64x128xbf16>, vector<1x128xf32> -> vector<1x128xf32>
    %125 = arith.addf %120, %124 : vector<1x128xf32>
    %126 = vector.extract_strided_slice %94 {offsets = [6, 0], sizes = [1, 64], strides = [1, 1]} : vector<9x64xbf16> to vector<1x64xbf16>
    %c6_104 = arith.constant 6 : index
    %c0_105 = arith.constant 0 : index
    %c0_106 = arith.constant 0 : index
    %127 = vector.load %arg9[%c6_104, %c0_105, %c0_106] : memref<9x64x128xbf16, #tpu.memory_space<vmem>>, vector<1x64x128xbf16>
    %128 = vector.shape_cast %127 : vector<1x64x128xbf16> to vector<64x128xbf16>
    %cst_107 = arith.constant dense<0.000000e+00> : vector<1x128xf32>
    %129 = tpu.matmul %126, %128, %cst_107 {dimension_numbers = #tpu.dot_dimension_numbers<[1], [0], [0], [1], [0, 0, 1, 1], [], []>} : vector<1x64xbf16>, vector<64x128xbf16>, vector<1x128xf32> -> vector<1x128xf32>
    %130 = arith.addf %125, %129 : vector<1x128xf32>
    %131 = vector.extract_strided_slice %94 {offsets = [7, 0], sizes = [1, 64], strides = [1, 1]} : vector<9x64xbf16> to vector<1x64xbf16>
    %c7_108 = arith.constant 7 : index
    %c0_109 = arith.constant 0 : index
    %c0_110 = arith.constant 0 : index
    %132 = vector.load %arg9[%c7_108, %c0_109, %c0_110] : memref<9x64x128xbf16, #tpu.memory_space<vmem>>, vector<1x64x128xbf16>
    %133 = vector.shape_cast %132 : vector<1x64x128xbf16> to vector<64x128xbf16>
    %cst_111 = arith.constant dense<0.000000e+00> : vector<1x128xf32>
    %134 = tpu.matmul %131, %133, %cst_111 {dimension_numbers = #tpu.dot_dimension_numbers<[1], [0], [0], [1], [0, 0, 1, 1], [], []>} : vector<1x64xbf16>, vector<64x128xbf16>, vector<1x128xf32> -> vector<1x128xf32>
    %135 = arith.addf %130, %134 : vector<1x128xf32>
    %136 = vector.extract_strided_slice %94 {offsets = [8, 0], sizes = [1, 64], strides = [1, 1]} : vector<9x64xbf16> to vector<1x64xbf16>
    %c8_112 = arith.constant 8 : index
    %c0_113 = arith.constant 0 : index
    %c0_114 = arith.constant 0 : index
    %137 = vector.load %arg9[%c8_112, %c0_113, %c0_114] : memref<9x64x128xbf16, #tpu.memory_space<vmem>>, vector<1x64x128xbf16>
    %138 = vector.shape_cast %137 : vector<1x64x128xbf16> to vector<64x128xbf16>
    %cst_115 = arith.constant dense<0.000000e+00> : vector<1x128xf32>
    %139 = tpu.matmul %136, %138, %cst_115 {dimension_numbers = #tpu.dot_dimension_numbers<[1], [0], [0], [1], [0, 0, 1, 1], [], []>} : vector<1x64xbf16>, vector<64x128xbf16>, vector<1x128xf32> -> vector<1x128xf32>
    %140 = arith.addf %135, %139 : vector<1x128xf32>
    %c0_116 = arith.constant 0 : index
    %c0_117 = arith.constant 0 : index
    %141 = vector.load %arg10[%c0_116, %c0_117] : memref<1x128xf32, #tpu.memory_space<vmem>>, vector<1x128xf32>
    %142 = arith.mulf %140, %141 : vector<1x128xf32>
    %c0_118 = arith.constant 0 : index
    %c0_119 = arith.constant 0 : index
    %143 = vector.load %arg11[%c0_118, %c0_119] : memref<1x128xf32, #tpu.memory_space<vmem>>, vector<1x128xf32>
    %144 = arith.addf %142, %143 : vector<1x128xf32>
    %cst_120 = arith.constant 0.000000e+00 : f32
    %145 = vector.broadcast %cst_120 : f32 to vector<1x128xf32>
    %146 = arith.maximumf %144, %145 : vector<1x128xf32>
    %147 = arith.truncf %146 : vector<1x128xf32> to vector<1x128xbf16>
    %c0_121 = arith.constant 0 : index
    %c0_122 = arith.constant 0 : index
    %148 = vector.load %arg12[%c0_121, %c0_122] : memref<128x256xbf16, #tpu.memory_space<vmem>>, vector<128x256xbf16>
    %cst_123 = arith.constant dense<0.000000e+00> : vector<1x256xf32>
    %149 = tpu.matmul %147, %148, %cst_123 {dimension_numbers = #tpu.dot_dimension_numbers<[1], [0], [0], [1], [0, 0, 1, 1], [], []>} : vector<1x128xbf16>, vector<128x256xbf16>, vector<1x256xf32> -> vector<1x256xf32>
    %c0_124 = arith.constant 0 : index
    %c0_125 = arith.constant 0 : index
    %150 = vector.load %arg13[%c0_124, %c0_125] : memref<1x256xf32, #tpu.memory_space<vmem>>, vector<1x256xf32>
    %151 = arith.addf %149, %150 : vector<1x256xf32>
    %cst_126 = arith.constant 0.000000e+00 : f32
    %152 = vector.broadcast %cst_126 : f32 to vector<1x256xf32>
    %153 = arith.maximumf %151, %152 : vector<1x256xf32>
    %154 = arith.truncf %153 : vector<1x256xf32> to vector<1x256xbf16>
    %c0_127 = arith.constant 0 : index
    %c0_128 = arith.constant 0 : index
    %155 = vector.load %arg14[%c0_127, %c0_128] : memref<256x8xbf16, #tpu.memory_space<vmem>>, vector<256x8xbf16>
    %cst_129 = arith.constant dense<0.000000e+00> : vector<1x8xf32>
    %156 = tpu.matmul %154, %155, %cst_129 {dimension_numbers = #tpu.dot_dimension_numbers<[1], [0], [0], [1], [0, 0, 1, 1], [], []>} : vector<1x256xbf16>, vector<256x8xbf16>, vector<1x8xf32> -> vector<1x8xf32>
    %c0_130 = arith.constant 0 : index
    %c0_131 = arith.constant 0 : index
    %157 = vector.load %arg15[%c0_130, %c0_131] : memref<1x8xf32, #tpu.memory_space<vmem>>, vector<1x8xf32>
    %158 = arith.addf %156, %157 : vector<1x8xf32>
    %c0_132 = arith.constant 0 : index
    %c0_133 = arith.constant 0 : index
    %c0_134 = arith.constant 0 : index
    %159 = vector.load %arg16[%c0_132, %c0_133, %c0_134] : memref<1x1x8xf32, #tpu.memory_space<vmem>>, vector<1x1x8xf32>
    %160 = vector.shape_cast %159 : vector<1x1x8xf32> to vector<1x8xf32>
    %161 = vector.shape_cast %158 : vector<1x8xf32> to vector<1x1x8xf32>
    tpu.vector_store %arg16[%c0_132, %c0_133, %c0_134], %161 {strides = array<i32>} : memref<1x1x8xf32, #tpu.memory_space<vmem>>, vector<1x1x8xf32>,
    return
  }
  func.func @transform_0(%arg0: i32) -> (i32, i32, i32) {
    %c0_i32 = arith.constant 0 : i32
    %c0_i32_0 = arith.constant 0 : i32
    %c0_i32_1 = arith.constant 0 : i32
    return %arg0, %c0_i32, %c0_i32_0 : i32, i32, i32
  }
  func.func @transform_1(%arg0: i32) -> (i32, i32) {
    %c0_i32 = arith.constant 0 : i32
    %c0_i32_0 = arith.constant 0 : i32
    %c0_i32_1 = arith.constant 0 : i32
    return %c0_i32, %c0_i32_0 : i32, i32
  }
  func.func @transform_2(%arg0: i32) -> (i32, i32) {
    %c0_i32 = arith.constant 0 : i32
    %c0_i32_0 = arith.constant 0 : i32
    %c0_i32_1 = arith.constant 0 : i32
    return %c0_i32, %c0_i32_0 : i32, i32
  }
  func.func @transform_3(%arg0: i32) -> (i32, i32) {
    %c0_i32 = arith.constant 0 : i32
    %c0_i32_0 = arith.constant 0 : i32
    %c0_i32_1 = arith.constant 0 : i32
    return %c0_i32, %c0_i32_0 : i32, i32
  }
  func.func @transform_4(%arg0: i32) -> (i32, i32, i32) {
    %c0_i32 = arith.constant 0 : i32
    %c0_i32_0 = arith.constant 0 : i32
    %c0_i32_1 = arith.constant 0 : i32
    %c0_i32_2 = arith.constant 0 : i32
    return %c0_i32, %c0_i32_0, %c0_i32_1 : i32, i32, i32
  }
  func.func @transform_5(%arg0: i32) -> (i32, i32, i32) {
    %c0_i32 = arith.constant 0 : i32
    %c0_i32_0 = arith.constant 0 : i32
    %c0_i32_1 = arith.constant 0 : i32
    %c0_i32_2 = arith.constant 0 : i32
    return %c0_i32, %c0_i32_0, %c0_i32_1 : i32, i32, i32
  }
  func.func @transform_6(%arg0: i32) -> (i32, i32) {
    %c0_i32 = arith.constant 0 : i32
    %c0_i32_0 = arith.constant 0 : i32
    %c0_i32_1 = arith.constant 0 : i32
    return %c0_i32, %c0_i32_0 : i32, i32
  }
  func.func @transform_7(%arg0: i32) -> (i32, i32) {
    %c0_i32 = arith.constant 0 : i32
    %c0_i32_0 = arith.constant 0 : i32
    %c0_i32_1 = arith.constant 0 : i32
    return %c0_i32, %c0_i32_0 : i32, i32
  }
  func.func @transform_8(%arg0: i32) -> (i32, i32, i32) {
    %c0_i32 = arith.constant 0 : i32
    %c0_i32_0 = arith.constant 0 : i32
    %c0_i32_1 = arith.constant 0 : i32
    %c0_i32_2 = arith.constant 0 : i32
    return %c0_i32, %c0_i32_0, %c0_i32_1 : i32, i32, i32
  }
  func.func @transform_9(%arg0: i32) -> (i32, i32) {
    %c0_i32 = arith.constant 0 : i32
    %c0_i32_0 = arith.constant 0 : i32
    %c0_i32_1 = arith.constant 0 : i32
    return %c0_i32, %c0_i32_0 : i32, i32
  }
  func.func @transform_10(%arg0: i32) -> (i32, i32) {
    %c0_i32 = arith.constant 0 : i32
    %c0_i32_0 = arith.constant 0 : i32
    %c0_i32_1 = arith.constant 0 : i32
    return %c0_i32, %c0_i32_0 : i32, i32
  }
  func.func @transform_11(%arg0: i32) -> (i32, i32) {
    %c0_i32 = arith.constant 0 : i32
    %c0_i32_0 = arith.constant 0 : i32
    %c0_i32_1 = arith.constant 0 : i32
    return %c0_i32, %c0_i32_0 : i32, i32
  }
  func.func @transform_12(%arg0: i32) -> (i32, i32) {
    %c0_i32 = arith.constant 0 : i32
    %c0_i32_0 = arith.constant 0 : i32
    %c0_i32_1 = arith.constant 0 : i32
    return %c0_i32, %c0_i32_0 : i32, i32
  }
  func.func @transform_13(%arg0: i32) -> (i32, i32) {
    %c0_i32 = arith.constant 0 : i32
    %c0_i32_0 = arith.constant 0 : i32
    %c0_i32_1 = arith.constant 0 : i32
    return %c0_i32, %c0_i32_0 : i32, i32
  }
  func.func @transform_14(%arg0: i32) -> (i32, i32) {
    %c0_i32 = arith.constant 0 : i32
    %c0_i32_0 = arith.constant 0 : i32
    %c0_i32_1 = arith.constant 0 : i32
    return %c0_i32, %c0_i32_0 : i32, i32
  }
  func.func @transform_15(%arg0: i32) -> (i32, i32, i32) {
    %c0_i32 = arith.constant 0 : i32
    %c0_i32_0 = arith.constant 0 : i32
    %c0_i32_1 = arith.constant 0 : i32
    return %arg0, %c0_i32, %c0_i32_0 : i32, i32, i32
  }
}

</mosaic_0001>

<bundles_post_ra>
// kernel: racecar_forward.1
= control target key start
LH: loop header
LB: loop body
LE: loop exit
PB: predicated region body
PF: predicated region fallthrough
CT: control target
= control target key end

     0   :  { %s3721_s18 = smov 0   ;;  %s4291_s0 = inlined_call_operand.vmem [shape: bf16[2,49,36], index: 0, kind: input, shape index: {}]   ;;  %s4292_s1 = inlined_call_operand.vmem [shape: bf16[36,32], index: 1, kind: input, shape index: {}]   ;;  %s4293_s2 = inlined_call_operand.vmem [shape: f32[1,32], index: 2, kind: input, shape index: {}]   ;;  %s4294_s3 = inlined_call_operand.vmem [shape: f32[1,32], index: 3, kind: input, shape index: {}]   ;;  %s4295_s4 = inlined_call_operand.vmem [shape: bf16[9,9,49], index: 4, kind: input, shape index: {}]   ;;  %s4296_s5 = inlined_call_operand.vmem [shape: bf16[9,32,64], index: 5, kind: input, shape index: {}]   ;;  %s4297_s6 = inlined_call_operand.vmem [shape: f32[1,64], index: 6, kind: input, shape index: {}]   ;;  %s4298_s7 = inlined_call_operand.vmem [shape: f32[1,64], index: 7, kind: input, shape index: {}]   ;;  %s4299_s8 = inlined_call_operand.vmem [shape: bf16[9,64,128], index: 8, kind: input, shape index: {}]   ;;  %s4300_s9 = inlined_call_operand.vmem [shape: f32[1,128], index: 9, kind: input, shape index: {}]   ;;  %s4301_s10 = inlined_call_operand.vmem [shape: f32[1,128], index: 10, kind: input, shape index: {}]   ;;  %s4302_s11 = inlined_call_operand.vmem [shape: bf16[128,256], index: 11, kind: input, shape index: {}]   ;;  %s4303_s12 = inlined_call_operand.vmem [shape: f32[1,256], index: 12, kind: input, shape index: {}]   ;;  %s4304_s13 = inlined_call_operand.vmem [shape: bf16[256,8], index: 13, kind: input, shape index: {}]   ;;  %s4305_s14 = inlined_call_operand.vmem [shape: f32[1,8], index: 14, kind: input, shape index: {}]   ;;  %s4306_s15 = inlined_call_operand.vmem [shape: f32[2,1,8], index: 15, kind: output, shape index: {}]  }
   0x1 LB: > { %s2802_s19 = sadd.s32 4294967295, %s3636_s18   ;;  %p2806_p0 = scmp.ge.s32.totalorder %s3636_s18, 1  ;;  %s3636_s18 = sphi %s3721_s18, %s25_s18  }
   0x2   : > { %p437_p1 = scmp.lt.s32.totalorder %s3636_s18, 3 }
   0x4   : > { %p438_p2 = pnand %p2806_p0, %p437_p1 }
   0x5   : > { %p483_p3 = scmp.lt.s32.totalorder (!%p438_p2), %s2802_s19, 1 }
   0x6   : > { %441 = sbr.rel (%p438_p2) target bundleno = 2832 (0xb10), region = 80 }
   0xb   : > { %v3520_v0 = vld [vmem:[%s4292_s1 + $0x10] ss:$0 sps:$4 sm:$0x33]   ;;  %vm550_vm0 = vcmask 1041408   ;;  %v3521_v1 = vld [vmem:[%s4292_s1 + $0x8] sm:$0xff]   ;;  %v3522_v3 = vld [vmem:[%s4292_s1] sm:$0xff]  }
   0xc   : > { %3507 = vmatprep.subr.msk.bf16.mxu0 %vm550_vm0, %v3520_v0  ;;  %v552_v2 = vsel %vm550_vm0, %v3520_v0, 0  ;;  %s4308_s19 = smov (!%p483_p3, %s2802_s19), 1  ;;  %vm537_vm1 = vcmask 293888   ;;  %v3638_v8 = vmov 0.0   ;;  %vm3639_vm2 = vmmov 0   ;;  %v3529_v49 = vld [vmem:[%s4296_s5 + $0x18] sm:$0xff]  }
   0xd   : > { %3206 = vmatpush3.bf16.msra.mxu0 %v552_v2  ;;  %s3508_s26 = smul.u32 28, %s4308_s19  ;;  %3219 = vmatprep.subr.bf16.mxu1 %v3638_v8  ;;  %v2819_v13 = vld [vmem:[%s4293_s2] ss:$0 sm:$0xff]  ;;  %vm668_vm3 = vcmask 1040384   ;;  %v3640_v23 = vmov 0   ;;  %vm664_vm4 = vcmask 400384   ;;  %s490_s30 = scalar_lea.vmem %s4306_s15, %s4308_s19 }
   0xe   : > { %3207 = vmatprep.subr.bf16.mxu0 %v3521_v1  ;;  %3227 = vmatprep.mubr.msk.bf16.mxu1 %vm3639_vm2, %v3638_v8  ;;  %v2820_v16 = vld [vmem:[%s4294_s3] ss:$0 sm:$0xff]  ;;  %v670_v24 = vsel %vm668_vm3, 65535, %v3640_v23  ;;  %v3528_v48 = vld [vmem:[%s4295_s4 + $0x8] sm:$0x1f]   ;;  %v3531_v51 = vld [vmem:[%s4296_s5 + $0x10] sm:$0xff]  }
   0xf   : > { %s487_s29 = scalar_lea.vmem %s4291_s0, %s3508_s26  ;;  %v3527_v47 = vld [vmem:[%s4295_s4] sm:$0x1f]   ;;  %v3530_v50 = vld [vmem:[%s4296_s5 + $0x8] sm:$0xff]   ;;  %vm790_vm5 = vcmask 261120   ;;  %v3533_v63 = vld [vmem:[%s4295_s4 + $0x10] sm:$0x1f]  }
  0x10   : > { %v3523_v4 = vld [vmem:[%s487_s29] sm:$0xff]   ;;  %v3524_v5 = vld [vmem:[%s487_s29 + $0x8] sm:$0xff]   ;;  %v3525_v6 = vld [vmem:[%s487_s29 + $0x10] sm:$0xff]   ;;  %vm1768_vm6 = vcmask 523264   ;;  %vm2753_vm7 = vcmask 57344  }
  0x11   : > { %3208 = vmatpush3.bf16.msra.mxu0 %v3521_v1  ;;  %3211 = vmatprep.mubr.msk.bf16.mxu0 %vm537_vm1, %v3523_v4  ;;  %v3526_v7 = vld [vmem:[%s487_s29 + $0x18] ss:$0 sps:$4 sm:$0x11]   ;;  %v3532_v52 = vld [vmem:[%s4296_s5] sm:$0xff]   ;;  %v3534_v0 = vld [vmem:[%s4296_s5 + $0x28] sm:$0xff]  }
  0x12   : > { %3209 = vmatprep.subr.bf16.mxu0 %v3522_v3  ;;  %v3535_v1 = vld [vmem:[%s4296_s5 + $0x20] sm:$0xff]  }
  0x15   : > { %3210 = vmatpush3.bf16.msra.mxu0 %v3522_v3 }
  0x16   : > { %3231 = vmatprep.subr.bf16.mxu0 %v3638_v8 }
  0x18   : > { %3212 = vmatmul.mubr.msk.bf16.vlgmr.msra.gmra.mxu0 %vm537_vm1, %v3524_v5 }
  0x19   : > { %3215 = vmatprep.mubr.msk.bf16.mxu0 %vm537_vm1, %v3525_v6 }
  0x20   : > { %3216 = vmatmul.mubr.msk.bf16.gmra.mxu0 %vm537_vm1, %v3526_v7 }
  0x21   : > { %3239 = vmatprep.mubr.msk.bf16.mxu0 %vm3639_vm2, %v3638_v8 }
  0xd8   : > { %v3213_v9 = vpop.f32.mrf.mxu0 }
  0xd9   : > { %v627_v26 = vmul.f32 %v3213_v9, %v2819_v13 }
  0xda   : > { %v588_v10 = vpop.f32.mrf.mxu0 }
  0xdb   : > { %v641_v34 = vadd.f32 %v2820_v16, %v627_v26  ;;  %v625_v35 = vmul.f32 %v2819_v13, %v588_v10 }
  0xdc   : > { %v3214_v11 = vpop.f32.mrf.mxu0 }
  0xdd   : > { %v628_v21 = vmul.f32 %v3214_v11, %v2819_v13  ;;  %v648_v41 = vmax.f32 %v641_v34, 0.0  ;;  %v639_v42 = vadd.f32 %v2820_v16, %v625_v35  ;;  %v3539_v34 = vld [vmem:[%s4295_s4 + $0x20] sm:$0x1f]   ;;  %v3540_v35 = vld [vmem:[%s4296_s5 + $0x48] sm:$0xff]  }
  0xde   : > { %v591_v12 = vpop.f32.mrf.mxu0 }
  0xdf   : > { %v642_v30 = vadd.f32 %v2820_v16, %v628_v21  ;;  %v626_v31 = vmul.f32 %v2819_v13, %v591_v12  ;;  %v646_v45 = vmax.f32 %v639_v42, 0.0 }
  0xe0   : > { %v3217_v14 = vpop.f32.mrf.mxu0 }
  0xe1   : > { %v631_v15 = vmul.f32 %v3217_v14, %v2819_v13  ;;  %v649_v38 = vmax.f32 %v642_v30, 0.0  ;;  %v640_v39 = vadd.f32 %v2820_v16, %v626_v31 }
  0xe2   : > { %v604_v17 = vpop.f32.mrf.mxu0 }
  0xe3   : > { %v645_v18 = vadd.f32 %v2820_v16, %v631_v15  ;;  %v629_v19 = vmul.f32 %v2819_v13, %v604_v17  ;;  %v3769_v43 = vpack.c.bf16 %v649_v38, %v648_v41  ;;  %v647_v44 = vmax.f32 %v640_v39, 0.0 }
  0xe4   : > { %v3218_v20 = vpop.f32.mrf.mxu0 }
  0xe5   : > { %v652_v22 = vmax.f32 %v645_v18, 0.0  ;;  %v643_v28 = vadd.f32 %v2820_v16, %v629_v19  ;;  %v3775_v46 = vpack.c.bf16 %v647_v44, %v646_v45  ;;  %v3536_v18 = vld [vmem:[%s4295_s4 + $0x18] sm:$0x1f]   ;;  %v3538_v20 = vld [vmem:[%s4296_s5 + $0x30] sm:$0xff]  }
  0xe6   : > { %v607_v25 = vpop.f32.mrf.mxu0  ;;  %v3537_v19 = vld [vmem:[%s4296_s5 + $0x38] sm:$0xff]  }
  0xe7   : > { %v656_v27 = vpack.c.bf16 %v652_v22, %v652_v22  ;;  %v630_v29 = vmul.f32 %v2819_v13, %v607_v25  ;;  %v650_v36 = vmax.f32 %v643_v28, 0.0 }
  0xe9   : > { %v3757_v32 = vand.u32 %v670_v24, %v656_v27  ;;  %v644_v33 = vadd.f32 %v2820_v16, %v630_v29 }
  0xeb   : > { %v651_v37 = vmax.f32 %v644_v33, 0.0  ;;  %3220 = vmatpush3.bf16.msra.mxu1 %v3757_v32  ;;  %3232 = vmatpush3.bf16.msra.mxu0 %v3757_v32 }
  0xec   : > { %3221 = vmatprep.subr.bf16.mxu1 %v3638_v8  ;;  %3233 = vmatprep.subr.bf16.mxu0 %v3638_v8 }
  0xed   : > { %v3763_v40 = vpack.c.bf16 %v651_v37, %v650_v36  ;;  %v3541_v36 = vld [vmem:[%s4296_s5 + $0x40] sm:$0xff]  }
  0xef   : > { %3222 = vmatpush3.bf16.msra.mxu1 %v3763_v40  ;;  %3234 = vmatpush3.bf16.msra.mxu0 %v3763_v40 }
  0xf0   : > { %3223 = vmatprep.subr.bf16.mxu1 %v3638_v8  ;;  %3235 = vmatprep.subr.bf16.mxu0 %v3638_v8 }
  0xf3   : > { %3224 = vmatpush3.bf16.msra.mxu1 %v3769_v43  ;;  %3236 = vmatpush3.bf16.msra.mxu0 %v3769_v43 }
  0xf4   : > { %3225 = vmatprep.subr.bf16.mxu1 %v3638_v8  ;;  %3237 = vmatprep.subr.bf16.mxu0 %v3638_v8 }
  0xf7   : > { %3226 = vmatpush3.bf16.msra.mxu1 %v3775_v46  ;;  %3238 = vmatpush3.bf16.msra.mxu0 %v3775_v46 }
  0xf8   : > { %3243 = vmatprep.subr.bf16.mxu0 %v3638_v8  ;;  %3251 = vmatprep.subr.bf16.mxu1 %v3638_v8 }
  0xfa   : > { %3228 = vmatmul.mubr.msk.bf16.vlgmr.msra.gmra.mxu1 %vm664_vm4, %v3527_v47  ;;  %3240 = vmatmul.mubr.msk.bf16.vlgmr.msra.gmra.mxu0 %vm664_vm4, %v3528_v48 }
  0xfb   : > { %3244 = vmatpush3.bf16.msra.mxu0 %v3529_v49  ;;  %3247 = vmatprep.mubr.msk.bf16.mxu0 %vm3639_vm2, %v3638_v8 }
  0xfc   : > { %3245 = vmatprep.subr.bf16.mxu0 %v3638_v8  ;;  %3255 = vmatprep.mubr.msk.bf16.mxu1 %vm3639_vm2, %v3638_v8 }
  0xfd   : > { %3252 = vmatpush3.bf16.msra.mxu1 %v3530_v50 }
  0xfe   : > { %3253 = vmatprep.subr.bf16.mxu1 %v3638_v8 }
  0xff   : > { %3246 = vmatpush3.bf16.msra.mxu0 %v3531_v51  ;;  %v3542_v51 = vld [vmem:[%s4295_s4 + $0x28] sm:$0x1f]  }
 0x100   : > { %3259 = vmatprep.subr.bf16.mxu0 %v3638_v8 }
 0x101   : > { %3254 = vmatpush3.bf16.msra.mxu1 %v3532_v52  ;;  %v3543_v52 = vld [vmem:[%s4296_s5 + $0x58] sm:$0xff]  }
 0x102   : > { %3271 = vmatprep.subr.bf16.mxu1 %v3638_v8 }
 0x1ba   : > { %v708_v53 = vpop.f32.mrf.mxu1  ;;  %v765_v54 = vpop.f32.mrf.mxu0 }
 0x1bc   : > { %v3229_v55 = vpop.f32.mrf.mxu1  ;;  %v3241_v56 = vpop.f32.mrf.mxu0 }
 0x1be   : > { %v711_v57 = vpop.f32.mrf.mxu1  ;;  %v768_v58 = vpop.f32.mrf.mxu0 }
 0x1bf   : > { %v715_v59 = vpack.c.bf16 %v711_v57, %v708_v53  ;;  %v772_v60 = vpack.c.bf16 %v768_v58, %v765_v54  ;;  %v3544_v53 = vld [vmem:[%s4296_s5 + $0x50] sm:$0xff]  }
 0x1c0   : > { %v3242_v61 = vpop.f32.mrf.mxu0  ;;  %v3230_v62 = vpop.f32.mrf.mxu1 }
 0x1c1   : > { %3248 = vmatmul.mubr.msk.bf16.vlgmr.msra.gmra.mxu0 %vm790_vm5, %v772_v60  ;;  %3256 = vmatmul.mubr.msk.bf16.vlgmr.msra.gmra.mxu1 %vm790_vm5, %v715_v59 }
 0x1c2   : > { %3260 = vmatpush3.bf16.msra.mxu0 %v3757_v32  ;;  %3267 = vmatprep.mubr.msk.bf16.mxu0 %vm3639_vm2, %v3638_v8 }
 0x1c3   : > { %3261 = vmatprep.subr.bf16.mxu0 %v3638_v8  ;;  %3275 = vmatprep.mubr.msk.bf16.mxu1 %vm3639_vm2, %v3638_v8 }
 0x1c4   : > { %3272 = vmatpush3.bf16.msra.mxu1 %v3534_v0 }
 0x1c5   : > { %3273 = vmatprep.subr.bf16.mxu1 %v3638_v8 }
 0x1c6   : > { %3262 = vmatpush3.bf16.msra.mxu0 %v3763_v40 }
 0x1c7   : > { %3263 = vmatprep.subr.bf16.mxu0 %v3638_v8 }
 0x1c8   : > { %3274 = vmatpush3.bf16.msra.mxu1 %v3535_v1  ;;  %v3545_v1 = vld [vmem:[%s4295_s4 + $0x30] sm:$0x1f]  }
 0x1c9   : > { %3279 = vmatprep.subr.bf16.mxu1 %v3638_v8 }
 0x1ca   : > { %3264 = vmatpush3.bf16.msra.mxu0 %v3769_v43 }
 0x1cb   : > { %3265 = vmatprep.subr.bf16.mxu0 %v3638_v8 }
 0x1ce   : > { %3266 = vmatpush3.bf16.msra.mxu0 %v3775_v46 }
 0x1cf   : > { %3291 = vmatprep.subr.bf16.mxu0 %v3638_v8 }
 0x1d1   : > { %3268 = vmatmul.mubr.msk.bf16.vlgmr.msra.gmra.mxu0 %vm664_vm4, %v3533_v63 }
 0x1d2   : > { %3295 = vmatprep.mubr.msk.bf16.mxu0 %vm3639_vm2, %v3638_v8  ;;  %3292 = vmatpush3.bf16.msra.mxu0 %v3537_v19 }
 0x1d3   : > { %3293 = vmatprep.subr.bf16.mxu0 %v3638_v8 }
 0x1d6   : > { %3294 = vmatpush3.bf16.msra.mxu0 %v3538_v20 }
 0x1d7   : > { %3299 = vmatprep.subr.bf16.mxu0 %v3638_v8 }
 0x281   : > { %v828_v2 = vpop.f32.mrf.mxu0  ;;  %v884_v3 = vpop.f32.mrf.mxu1 }
 0x282   : > { %v885_v4 = vadd.f32 %v884_v3, %v828_v2  ;;  %v3546_v2 = vld [vmem:[%s4296_s5 + $0x68] sm:$0xff]   ;;  %v3547_v3 = vld [vmem:[%s4296_s5 + $0x60] sm:$0xff]  }
 0x283   : > { %v3249_v5 = vpop.f32.mrf.mxu0  ;;  %v3257_v6 = vpop.f32.mrf.mxu1 }
 0x285   : > { %v831_v7 = vpop.f32.mrf.mxu0  ;;  %v887_v9 = vpop.f32.mrf.mxu1 }
 0x286   : > { %v888_v10 = vadd.f32 %v887_v9, %v831_v7 }
 0x287   : > { %v3250_v11 = vpop.f32.mrf.mxu0  ;;  %v3258_v12 = vpop.f32.mrf.mxu1 }
 0x291   : > { %v936_v13 = vpop.f32.mrf.mxu0 }
 0x293   : > { %v3269_v14 = vpop.f32.mrf.mxu0 }
 0x295   : > { %v939_v15 = vpop.f32.mrf.mxu0 }
 0x296   : > { %v943_v16 = vpack.c.bf16 %v939_v15, %v936_v13 }
 0x297   : > { %v3270_v17 = vpop.f32.mrf.mxu0 }
 0x298   : > { %3276 = vmatmul.mubr.msk.bf16.vlgmr.msra.gmra.mxu1 %vm790_vm5, %v943_v16  ;;  %v3548_v16 = vld [vmem:[%s4295_s4 + $0x38] sm:$0x1f]  }
 0x299   : > { %3280 = vmatpush3.bf16.msra.mxu1 %v3757_v32  ;;  %3287 = vmatprep.mubr.msk.bf16.mxu1 %vm3639_vm2, %v3638_v8  ;;  %v3549_v17 = vld [vmem:[%s4296_s5 + $0x78] sm:$0xff]  }
 0x29a   : > { %3281 = vmatprep.subr.bf16.mxu1 %v3638_v8 }
 0x29d   : > { %3282 = vmatpush3.bf16.msra.mxu1 %v3763_v40 }
 0x29e   : > { %3283 = vmatprep.subr.bf16.mxu1 %v3638_v8 }
 0x2a1   : > { %3284 = vmatpush3.bf16.msra.mxu1 %v3769_v43 }
 0x2a2   : > { %3285 = vmatprep.subr.bf16.mxu1 %v3638_v8 }
 0x2a5   : > { %3286 = vmatpush3.bf16.msra.mxu1 %v3775_v46 }
 0x2a6   : > { %3311 = vmatprep.subr.bf16.mxu1 %v3638_v8 }
 0x2a8   : > { %3288 = vmatmul.mubr.msk.bf16.vlgmr.msra.gmra.mxu1 %vm664_vm4, %v3536_v18  ;;  %v3550_v18 = vld [vmem:[%s4296_s5 + $0x70] sm:$0xff]  }
 0x2a9   : > { %3315 = vmatprep.mubr.msk.bf16.mxu1 %vm3639_vm2, %v3638_v8  ;;  %3312 = vmatpush3.bf16.msra.mxu1 %v3540_v35 }
 0x2aa   : > { %3313 = vmatprep.subr.bf16.mxu1 %v3638_v8 }
 0x2ad   : > { %3314 = vmatpush3.bf16.msra.mxu1 %v3541_v36 }
 0x2ae   : > { %3319 = vmatprep.subr.bf16.mxu1 %v3638_v8 }
 0x358   : > { %v998_v21 = vpop.f32.mrf.mxu1 }
 0x359   : > { %v1005_v22 = vadd.f32 %v998_v21, %v885_v4 }
 0x35a   : > { %v3277_v24 = vpop.f32.mrf.mxu1 }
 0x35c   : > { %v1001_v25 = vpop.f32.mrf.mxu1 }
 0x35d   : > { %v1006_v26 = vadd.f32 %v1001_v25, %v888_v10 }
 0x35e   : > { %v3278_v27 = vpop.f32.mrf.mxu1 }
 0x368   : > { %v1052_v28 = vpop.f32.mrf.mxu1 }
 0x36a   : > { %v3289_v29 = vpop.f32.mrf.mxu1 }
 0x36c   : > { %v1055_v30 = vpop.f32.mrf.mxu1 }
 0x36d   : > { %v1059_v31 = vpack.c.bf16 %v1055_v30, %v1052_v28 }
 0x36e   : > { %v3290_v33 = vpop.f32.mrf.mxu1 }
 0x36f   : > { %3296 = vmatmul.mubr.msk.bf16.vlgmr.msra.gmra.mxu0 %vm790_vm5, %v1059_v31  ;;  %v3551_v31 = vld [vmem:[%s4295_s4 + $0x40] sm:$0x1f]  }
 0x370   : > { %3300 = vmatpush3.bf16.msra.mxu0 %v3757_v32  ;;  %3307 = vmatprep.mubr.msk.bf16.mxu0 %vm3639_vm2, %v3638_v8 }
 0x371   : > { %3301 = vmatprep.subr.bf16.mxu0 %v3638_v8 }
 0x374   : > { %3302 = vmatpush3.bf16.msra.mxu0 %v3763_v40 }
 0x375   : > { %3303 = vmatprep.subr.bf16.mxu0 %v3638_v8 }
 0x378   : > { %3304 = vmatpush3.bf16.msra.mxu0 %v3769_v43 }
 0x379   : > { %3305 = vmatprep.subr.bf16.mxu0 %v3638_v8 }
 0x37c   : > { %3306 = vmatpush3.bf16.msra.mxu0 %v3775_v46 }
 0x37d   : > { %3331 = vmatprep.subr.bf16.mxu0 %v3638_v8 }
 0x37f   : > { %3308 = vmatmul.mubr.msk.bf16.vlgmr.msra.gmra.mxu0 %vm664_vm4, %v3539_v34 }
 0x380   : > { %3335 = vmatprep.mubr.msk.bf16.mxu0 %vm3639_vm2, %v3638_v8  ;;  %3332 = vmatpush3.bf16.msra.mxu0 %v3543_v52  ;;  %v3561_v52 = vld [vmem:[%s4299_s8 + $0x20] sm:$0xff]  }
 0x381   : > { %3333 = vmatprep.subr.bf16.mxu0 %v3638_v8 }
 0x384   : > { %3334 = vmatpush3.bf16.msra.mxu0 %v3544_v53 }
 0x385   : > { %3339 = vmatprep.subr.bf16.mxu0 %v3638_v8 }
 0x42f   : > { %v1114_v37 = vpop.f32.mrf.mxu0 }
 0x430   : > { %v1121_v38 = vadd.f32 %v1114_v37, %v1005_v22 }
 0x431   : > { %v3297_v39 = vpop.f32.mrf.mxu0 }
 0x433   : > { %v1117_v41 = vpop.f32.mrf.mxu0 }
 0x434   : > { %v1122_v42 = vadd.f32 %v1117_v41, %v1006_v26 }
 0x435   : > { %v3298_v44 = vpop.f32.mrf.mxu0 }
 0x43f   : > { %v1168_v45 = vpop.f32.mrf.mxu0 }
 0x441   : > { %v3309_v47 = vpop.f32.mrf.mxu0 }
 0x442   : > { %v3556_v47 = vld [vmem:[%s4299_s8 + $0x10] sm:$0xff]  }
 0x443   : > { %v1171_v48 = vpop.f32.mrf.mxu0 }
 0x444   : > { %v1175_v49 = vpack.c.bf16 %v1171_v48, %v1168_v45  ;;  %v3555_v45 = vld [vmem:[%s4299_s8 + $0x38] sm:$0xff]   ;;  %v3557_v48 = vld [vmem:[%s4299_s8 + $0x30] sm:$0xff]  }
 0x445   : > { %v3310_v50 = vpop.f32.mrf.mxu0 }
 0x446   : > { %3316 = vmatmul.mubr.msk.bf16.vlgmr.msra.gmra.mxu1 %vm790_vm5, %v1175_v49  ;;  %v3558_v49 = vld [vmem:[%s4299_s8 + $0x8] sm:$0xff]  }
 0x447   : > { %3320 = vmatpush3.bf16.msra.mxu1 %v3757_v32  ;;  %3327 = vmatprep.mubr.msk.bf16.mxu1 %vm3639_vm2, %v3638_v8  ;;  %v3559_v50 = vld [vmem:[%s4299_s8 + $0x28] sm:$0xff]  }
 0x448   : > { %3321 = vmatprep.subr.bf16.mxu1 %v3638_v8 }
 0x44b   : > { %3322 = vmatpush3.bf16.msra.mxu1 %v3763_v40 }
 0x44c   : > { %3323 = vmatprep.subr.bf16.mxu1 %v3638_v8 }
 0x44f   : > { %3324 = vmatpush3.bf16.msra.mxu1 %v3769_v43 }
 0x450   : > { %3325 = vmatprep.subr.bf16.mxu1 %v3638_v8 }
 0x453   : > { %3326 = vmatpush3.bf16.msra.mxu1 %v3775_v46 }
 0x454   : > { %3351 = vmatprep.subr.bf16.mxu1 %v3638_v8 }
 0x456   : > { %3328 = vmatmul.mubr.msk.bf16.vlgmr.msra.gmra.mxu1 %vm664_vm4, %v3542_v51  ;;  %v3560_v51 = vld [vmem:[%s4299_s8] sm:$0xff]  }
 0x457   : > { %3355 = vmatprep.mubr.msk.bf16.mxu1 %vm3639_vm2, %v3638_v8  ;;  %3352 = vmatpush3.bf16.msra.mxu1 %v3546_v2 }
 0x458   : > { %3353 = vmatprep.subr.bf16.mxu1 %v3638_v8 }
 0x45b   : > { %3354 = vmatpush3.bf16.msra.mxu1 %v3547_v3  ;;  %v3562_v3 = vld [vmem:[%s4299_s8 + $0x78] sm:$0xff]  }
 0x45c   : > { %3359 = vmatprep.subr.bf16.mxu1 %v3638_v8 }
 0x506   : > { %v1230_v54 = vpop.f32.mrf.mxu1 }
 0x507   : > { %v1237_v55 = vadd.f32 %v1230_v54, %v1121_v38  ;;  %v2914_v54 = vld [vmem:[%s4297_s6] ss:$0 sm:$0xff] }
 0x508   : > { %v3317_v56 = vpop.f32.mrf.mxu1 }
 0x50a   : > { %v1233_v57 = vpop.f32.mrf.mxu1 }
 0x50b   : > { %v1238_v58 = vadd.f32 %v1233_v57, %v1122_v42 }
 0x50c   : > { %v3318_v59 = vpop.f32.mrf.mxu1 }
 0x516   : > { %v1284_v60 = vpop.f32.mrf.mxu1 }
 0x518   : > { %v3329_v61 = vpop.f32.mrf.mxu1 }
 0x51a   : > { %v1287_v62 = vpop.f32.mrf.mxu1 }
 0x51b   : > { %v1291_v63 = vpack.c.bf16 %v1287_v62, %v1284_v60 }
 0x51c   : > { %v3330_v0 = vpop.f32.mrf.mxu1 }
 0x51d   : > { %3336 = vmatmul.mubr.msk.bf16.vlgmr.msra.gmra.mxu0 %vm790_vm5, %v1291_v63 }
 0x51e   : > { %3340 = vmatpush3.bf16.msra.mxu0 %v3757_v32  ;;  %3347 = vmatprep.mubr.msk.bf16.mxu0 %vm3639_vm2, %v3638_v8 }
 0x51f   : > { %3341 = vmatprep.subr.bf16.mxu0 %v3638_v8 }
 0x522   : > { %3342 = vmatpush3.bf16.msra.mxu0 %v3763_v40 }
 0x523   : > { %3343 = vmatprep.subr.bf16.mxu0 %v3638_v8 }
 0x526   : > { %3344 = vmatpush3.bf16.msra.mxu0 %v3769_v43 }
 0x527   : > { %3345 = vmatprep.subr.bf16.mxu0 %v3638_v8 }
 0x52a   : > { %3346 = vmatpush3.bf16.msra.mxu0 %v3775_v46 }
 0x52b   : > { %3371 = vmatprep.subr.bf16.mxu0 %v3638_v8 }
 0x52d   : > { %3348 = vmatmul.mubr.msk.bf16.vlgmr.msra.gmra.mxu0 %vm664_vm4, %v3545_v1 }
 0x52e   : > { %3375 = vmatprep.mubr.msk.bf16.mxu0 %vm3639_vm2, %v3638_v8  ;;  %3372 = vmatpush3.bf16.msra.mxu0 %v3549_v17 }
 0x52f   : > { %3373 = vmatprep.subr.bf16.mxu0 %v3638_v8 }
 0x532   : > { %3374 = vmatpush3.bf16.msra.mxu0 %v3550_v18  ;;  %v3572_v18 = vld [vmem:[%s4299_s8 + $0xb0] sm:$0xff]  }
 0x533   : > { %3379 = vmatprep.subr.bf16.mxu0 %v3638_v8 }
 0x5dd   : > { %v1346_v4 = vpop.f32.mrf.mxu0 }
 0x5de   : > { %v1353_v5 = vadd.f32 %v1346_v4, %v1237_v55 }
 0x5df   : > { %v3337_v6 = vpop.f32.mrf.mxu0 }
 0x5e1   : > { %v1349_v7 = vpop.f32.mrf.mxu0 }
 0x5e2   : > { %v1354_v9 = vadd.f32 %v1349_v7, %v1238_v58  ;;  %v2915_v58 = vld [vmem:[%s4298_s7] ss:$0 sm:$0xff]  ;;  %v3564_v7 = vld [vmem:[%s4299_s8 + $0x70] sm:$0xff]  }
 0x5e3   : > { %v3338_v10 = vpop.f32.mrf.mxu0 }
 0x5e4   : > { %v3566_v10 = vld [vmem:[%s4299_s8 + $0x68] sm:$0xff]  }
 0x5ed   : > { %v1400_v11 = vpop.f32.mrf.mxu0 }
 0x5ef   : > { %v3349_v12 = vpop.f32.mrf.mxu0 }
 0x5f0   : > { %v3568_v12 = vld [vmem:[%s4299_s8 + $0x60] sm:$0xff]  }
 0x5f1   : > { %v1403_v13 = vpop.f32.mrf.mxu0 }
 0x5f2   : > { %v1407_v14 = vpack.c.bf16 %v1403_v13, %v1400_v11  ;;  %v3567_v11 = vld [vmem:[%s4299_s8 + $0x48] sm:$0xff]   ;;  %v3569_v13 = vld [vmem:[%s4299_s8 + $0x40] sm:$0xff]  }
 0x5f3   : > { %v3350_v15 = vpop.f32.mrf.mxu0 }
 0x5f4   : > { %3356 = vmatmul.mubr.msk.bf16.vlgmr.msra.gmra.mxu1 %vm790_vm5, %v1407_v14  ;;  %v3570_v14 = vld [vmem:[%s4299_s8 + $0xb8] sm:$0xff]  }
 0x5f5   : > { %3360 = vmatpush3.bf16.msra.mxu1 %v3757_v32  ;;  %3367 = vmatprep.mubr.msk.bf16.mxu1 %vm3639_vm2, %v3638_v8 }
 0x5f6   : > { %3361 = vmatprep.subr.bf16.mxu1 %v3638_v8 }
 0x5f9   : > { %3362 = vmatpush3.bf16.msra.mxu1 %v3763_v40 }
 0x5fa   : > { %3363 = vmatprep.subr.bf16.mxu1 %v3638_v8 }
 0x5fd   : > { %3364 = vmatpush3.bf16.msra.mxu1 %v3769_v43 }
 0x5fe   : > { %3365 = vmatprep.subr.bf16.mxu1 %v3638_v8 }
 0x601   : > { %3366 = vmatpush3.bf16.msra.mxu1 %v3775_v46 }
 0x602   : > { %3391 = vmatprep.subr.bf16.mxu1 %v3638_v8 }
 0x604   : > { %3368 = vmatmul.mubr.msk.bf16.vlgmr.msra.gmra.mxu1 %vm664_vm4, %v3548_v16  ;;  %v3571_v16 = vld [vmem:[%s4299_s8 + $0x98] sm:$0xff]  }
 0x605   : > { %3395 = vmatprep.mubr.msk.bf16.mxu1 %vm3639_vm2, %v3638_v8 }
 0x6b4   : > { %v1462_v19 = vpop.f32.mrf.mxu1 }
 0x6b5   : > { %v1469_v20 = vadd.f32 %v1462_v19, %v1353_v5  ;;  %v3563_v5 = vld [vmem:[%s4299_s8 + $0x58] sm:$0xff]   ;;  %v3573_v19 = vld [vmem:[%s4299_s8 + $0x90] sm:$0xff]  }
 0x6b6   : > { %v3357_v21 = vpop.f32.mrf.mxu1 }
 0x6b7   : > { %v3575_v21 = vld [vmem:[%s4299_s8 + $0x88] sm:$0xff]  }
 0x6b8   : > { %v1465_v22 = vpop.f32.mrf.mxu1 }
 0x6b9   : > { %v1470_v24 = vadd.f32 %v1465_v22, %v1354_v9  ;;  %v3565_v9 = vld [vmem:[%s4299_s8 + $0x50] sm:$0xff]   ;;  %v3576_v22 = vld [vmem:[%s4299_s8 + $0xa0] sm:$0xff]  }
 0x6ba   : > { %v3358_v25 = vpop.f32.mrf.mxu1 }
 0x6bb   : > { %v3578_v25 = vld [vmem:[%s4299_s8 + $0xf8] sm:$0xff]  }
 0x6c4   : > { %v1516_v26 = vpop.f32.mrf.mxu1 }
 0x6c6   : > { %v3369_v27 = vpop.f32.mrf.mxu1 }
 0x6c7   : > { %v3579_v27 = vld [vmem:[%s4299_s8 + $0xd8] sm:$0xff]  }
 0x6c8   : > { %v1519_v28 = vpop.f32.mrf.mxu1 }
 0x6c9   : > { %v1523_v29 = vpack.c.bf16 %v1519_v28, %v1516_v26 }
 0x6ca   : > { %v3370_v30 = vpop.f32.mrf.mxu1 }
 0x6cb   : > { %3376 = vmatmul.mubr.msk.bf16.vlgmr.msra.gmra.mxu0 %vm790_vm5, %v1523_v29  ;;  %v3580_v29 = vld [vmem:[%s4299_s8 + $0xf0] sm:$0xff]  }
 0x6cc   : > { %3380 = vmatpush3.bf16.msra.mxu0 %v3757_v32  ;;  %3387 = vmatprep.mubr.msk.bf16.mxu0 %vm3639_vm2, %v3638_v8  ;;  %v3552_v32 = vld [vmem:[%s4296_s5 + $0x88] sm:$0xff]   ;;  %v3581_v30 = vld [vmem:[%s4299_s8 + $0xd0] sm:$0xff]  }
 0x6cd   : > { %3381 = vmatprep.subr.bf16.mxu0 %v3638_v8  ;;  %3392 = vmatpush3.bf16.msra.mxu1 %v3552_v32  ;;  %v3583_v32 = vld [vmem:[%s4299_s8 + $0xc8] sm:$0xff]  }
 0x6ce   : > { %3393 = vmatprep.subr.bf16.mxu1 %v3638_v8 }
 0x6d0   : > { %3382 = vmatpush3.bf16.msra.mxu0 %v3763_v40  ;;  %v3553_v40 = vld [vmem:[%s4296_s5 + $0x80] sm:$0xff]  }
 0x6d1   : > { %3383 = vmatprep.subr.bf16.mxu0 %v3638_v8  ;;  %3394 = vmatpush3.bf16.msra.mxu1 %v3553_v40  ;;  %v3584_v40 = vld [vmem:[%s4299_s8 + $0xe0] sm:$0xff]  }
 0x6d2   : > { %3399 = vmatprep.subr.bf16.mxu1 %v3638_v8 }
 0x6d4   : > { %3384 = vmatpush3.bf16.msra.mxu0 %v3769_v43  ;;  %v3554_v43 = vld [vmem:[%s4299_s8 + $0x18] sm:$0xff]  }
 0x6d5   : > { %3385 = vmatprep.subr.bf16.mxu0 %v3638_v8 }
 0x6d8   : > { %3386 = vmatpush3.bf16.msra.mxu0 %v3775_v46 }
 0x6d9   : > { %3411 = vmatprep.subr.bf16.mxu0 %v3638_v8 }
 0x6db   : > { %3388 = vmatmul.mubr.msk.bf16.vlgmr.msra.gmra.mxu0 %vm664_vm4, %v3551_v31  ;;  %v3582_v31 = vld [vmem:[%s4299_s8 + $0xe8] sm:$0xff]  }
 0x6dc   : > { %3419 = vmatprep.mubr.msk.bf16.mxu0 %vm3639_vm2, %v3638_v8  ;;  %3412 = vmatpush3.bf16.msra.mxu0 %v3554_v43  ;;  %v3585_v43 = vld [vmem:[%s4299_s8 + $0xc0] sm:$0xff]  }
 0x6dd   : > { %3413 = vmatprep.subr.bf16.mxu0 %v3638_v8 }
 0x6e0   : > { %3414 = vmatpush3.bf16.msra.mxu0 %v3556_v47  ;;  %v3599_v47 = vld [vmem:[%s4302_s11 + $0x40] ss:$8 sps:$4 sm:$0xff]  }
 0x6e1   : > { %3415 = vmatprep.subr.bf16.mxu0 %v3638_v8 }
 0x6e4   : > { %3416 = vmatpush3.bf16.msra.mxu0 %v3558_v49  ;;  %v3602_v49 = vld [vmem:[%s4302_s11 + $0x30] ss:$8 sps:$4 sm:$0xff]  }
 0x6e5   : > { %3417 = vmatprep.subr.bf16.mxu0 %v3638_v8 }
 0x6e8   : > { %3418 = vmatpush3.bf16.msra.mxu0 %v3560_v51  ;;  %v3605_v51 = vld [vmem:[%s4302_s11 + $0x20] ss:$8 sps:$4 sm:$0xff]  }
 0x6e9   : > { %3435 = vmatprep.subr.bf16.mxu0 %v3638_v8 }
 0x78b   : > { %v1578_v46 = vpop.f32.mrf.mxu0 }
 0x78c   : > { %v1585_v33 = vadd.f32 %v1578_v46, %v1469_v20  ;;  %v3574_v20 = vld [vmem:[%s4299_s8 + $0xa8] sm:$0xff]  }
 0x78d   : > { %v3377_v34 = vpop.f32.mrf.mxu0 }
 0x78f   : > { %v1581_v35 = vpop.f32.mrf.mxu0 }
 0x790   : > { %v1586_v36 = vadd.f32 %v1581_v35, %v1470_v24  ;;  %v3577_v24 = vld [vmem:[%s4299_s8 + $0x80] sm:$0xff]   ;;  %v3587_v35 = vld [vmem:[%s4299_s8 + $0x110] sm:$0xff]  }
 0x791   : > { %v3378_v37 = vpop.f32.mrf.mxu0 }
 0x79b   : > { %v1632_v38 = vpop.f32.mrf.mxu0 }
 0x79d   : > { %v3389_v39 = vpop.f32.mrf.mxu0 }
 0x79e   : > { %v3592_v39 = vld [vmem:[%s4302_s11 + $0x74] ss:$8 sps:$4 sm:$0xff]  }
 0x79f   : > { %v1635_v41 = vpop.f32.mrf.mxu0 }
 0x7a0   : > { %v1639_v42 = vpack.c.bf16 %v1635_v41, %v1632_v38  ;;  %v3590_v38 = vld [vmem:[%s4302_s11 + $0x70] ss:$8 sps:$4 sm:$0xff]   ;;  %v3595_v41 = vld [vmem:[%s4302_s11 + $0x64] ss:$8 sps:$4 sm:$0xff]  }
 0x7a1   : > { %v3390_v44 = vpop.f32.mrf.mxu0 }
 0x7a2   : > { %3396 = vmatmul.mubr.msk.bf16.vlgmr.msra.gmra.mxu1 %vm790_vm5, %v1639_v42  ;;  %v3598_v42 = vld [vmem:[%s4302_s11 + $0x54] ss:$8 sps:$4 sm:$0xff]   ;;  %v3596_v44 = vld [vmem:[%s4302_s11 + $0x50] ss:$8 sps:$4 sm:$0xff]  }
 0x7a3   : > { %3407 = vmatprep.mubr.msk.bf16.mxu1 %vm3639_vm2, %v3638_v8  ;;  %3400 = vmatpush3.bf16.msra.mxu1 %v3555_v45  ;;  %v3601_v45 = vld [vmem:[%s4302_s11 + $0x44] ss:$8 sps:$4 sm:$0xff]  }
 0x7a4   : > { %3401 = vmatprep.subr.bf16.mxu1 %v3638_v8 }
 0x7a7   : > { %3402 = vmatpush3.bf16.msra.mxu1 %v3557_v48  ;;  %v3604_v48 = vld [vmem:[%s4302_s11 + $0x34] ss:$8 sps:$4 sm:$0xff]  }
 0x7a8   : > { %3403 = vmatprep.subr.bf16.mxu1 %v3638_v8 }
 0x7ab   : > { %3404 = vmatpush3.bf16.msra.mxu1 %v3559_v50  ;;  %v3607_v50 = vld [vmem:[%s4302_s11 + $0x24] ss:$8 sps:$4 sm:$0xff]  }
 0x7ac   : > { %3405 = vmatprep.subr.bf16.mxu1 %v3638_v8 }
 0x7af   : > { %3406 = vmatpush3.bf16.msra.mxu1 %v3561_v52  ;;  %v3610_v52 = vld [vmem:[%s4302_s11 + $0x14] ss:$8 sps:$4 sm:$0xff]  }
 0x7b0   : > { %3423 = vmatprep.subr.bf16.mxu1 %v3638_v8 }
 0x862   : > { %v1694_v53 = vpop.f32.mrf.mxu1 }
 0x863   : > { %v1701_v55 = vadd.f32 %v1694_v53, %v1585_v33  ;;  %v3586_v33 = vld [vmem:[%s4299_s8 + $0x118] sm:$0xff]  }
 0x864   : > { %v3397_v56 = vpop.f32.mrf.mxu1  ;;  %v3608_v53 = vld [vmem:[%s4302_s11 + $0x10] ss:$8 sps:$4 sm:$0xff]  }
 0x865   : > { %v1710_v57 = vmul.f32 %v2914_v54, %v1701_v55  ;;  %v3611_v55 = vld [vmem:[%s4302_s11] ss:$8 sps:$4 sm:$0xff]   ;;  %v3614_v56 = vld [vmem:[%s4304_s13 + $0x78] sm:$0xff]  }
 0x866   : > { %v1697_v59 = vpop.f32.mrf.mxu1 }
 0x867   : > { %v1702_v60 = vadd.f32 %v1697_v59, %v1586_v36  ;;  %v1719_v62 = vadd.f32 %v2915_v58, %v1710_v57  ;;  %v3588_v36 = vld [vmem:[%s4299_s8 + $0x108] sm:$0xff]   ;;  %v3615_v57 = vld [vmem:[%s4304_s13 + $0x38] sm:$0xff]   ;;  %v3617_v59 = vld [vmem:[%s4304_s13 + $0x30] sm:$0xff]  }
 0x868   : > { %v3398_v61 = vpop.f32.mrf.mxu1 }
 0x869   : > { %v1711_v63 = vmul.f32 %v2914_v54, %v1702_v60  ;;  %v1721_v1 = vmax.f32 %v1719_v62, 0.0  ;;  %v3613_v54 = vld [vmem:[%s4302_s11 + $0x4] ss:$8 sps:$4 sm:$0xff]  }
 0x86a   : > { %v3618_v60 = vld [vmem:[%s4304_s13 + $0x68] sm:$0xff]   ;;  %v3620_v62 = vld [vmem:[%s4304_s13 + $0x60] sm:$0xff]  }
 0x86b   : > { %v1720_v0 = vadd.f32 %v2915_v58, %v1711_v63  ;;  %v3616_v58 = vld [vmem:[%s4304_s13 + $0x70] sm:$0xff]   ;;  %v3619_v61 = vld [vmem:[%s4304_s13 + $0x28] sm:$0xff]   ;;  %v3621_v63 = vld [vmem:[%s4304_s13 + $0x20] sm:$0xff]  }
 0x86d   : > { %v1722_v2 = vmax.f32 %v1720_v0, 0.0  ;;  %v3622_v0 = vld [vmem:[%s4304_s13 + $0x58] sm:$0xff]  }
 0x86f   : > { %v4031_v4 = vpack.c.bf16 %v1722_v2, %v1721_v1  ;;  %v3623_v1 = vld [vmem:[%s4304_s13 + $0x18] sm:$0xff]   ;;  %v3624_v2 = vld [vmem:[%s4304_s13 + $0x50] sm:$0xff]  }
 0x871   : > { %3420 = vmatmul.mubr.msk.bf16.vlgmr.msra.gmra.mxu0 %vm1768_vm6, %v4031_v4  ;;  %v4039_v6 = vshrl.u32 %v4031_v4, 16  ;;  %v1888_v17 = vrot.slane %v4031_v4, 1  ;;  %v2044_v28 = vrot.slane %v4031_v4, 2  ;;  %v2200_v34 = vrot.slane %v4031_v4, 3 }
 0x872   : > { %3436 = vmatpush3.bf16.msra.mxu0 %v3562_v3  ;;  %3443 = vmatprep.mubr.msk.bf16.mxu0 %vm3639_vm2, %v3638_v8  ;;  %v2356_v37 = vrot.slane %v4031_v4, 4  ;;  %v3625_v3 = vld [vmem:[%s4304_s13 + $0x10] sm:$0xff]  }
 0x873   : > { %3408 = vmatmul.mubr.msk.bf16.vlgmr.msra.gmra.mxu1 %vm1768_vm6, %v4039_v6  ;;  %3437 = vmatprep.subr.bf16.mxu0 %v3638_v8  ;;  %v1966_v15 = vrot.slane %v4039_v6, 1  ;;  %v2122_v26 = vrot.slane %v4039_v6, 2  ;;  %v2278_v46 = vrot.slane %v4039_v6, 3 }
 0x874   : > { %3424 = vmatpush3.bf16.msra.mxu1 %v3563_v5  ;;  %3431 = vmatprep.mubr.msk.bf16.mxu1 %vm3639_vm2, %v3638_v8 }
 0x875   : > { %3425 = vmatprep.subr.bf16.mxu1 %v3638_v8 }
 0x876   : > { %3438 = vmatpush3.bf16.msra.mxu0 %v3564_v7 }
 0x877   : > { %3439 = vmatprep.subr.bf16.mxu0 %v3638_v8 }
 0x878   : > { %3426 = vmatpush3.bf16.msra.mxu1 %v3565_v9 }
 0x879   : > { %3427 = vmatprep.subr.bf16.mxu1 %v3638_v8 }
 0x87a   : > { %3440 = vmatpush3.bf16.msra.mxu0 %v3566_v10 }
 0x87b   : > { %3441 = vmatprep.subr.bf16.mxu0 %v3638_v8 }
 0x87c   : > { %3428 = vmatpush3.bf16.msra.mxu1 %v3567_v11 }
 0x87d   : > { %3429 = vmatprep.subr.bf16.mxu1 %v3638_v8 }
 0x87e   : > { %3442 = vmatpush3.bf16.msra.mxu0 %v3568_v12 }
 0x87f   : > { %3459 = vmatprep.subr.bf16.mxu0 %v3638_v8 }
 0x880   : > { %3430 = vmatpush3.bf16.msra.mxu1 %v3569_v13 }
 0x881   : > { %3444 = vmatmul.mubr.msk.bf16.vlgmr.msra.gmra.mxu0 %vm1768_vm6, %v1966_v15  ;;  %3447 = vmatprep.subr.bf16.mxu1 %v3638_v8 }
 0x882   : > { %3460 = vmatpush3.bf16.msra.mxu0 %v3570_v14  ;;  %3467 = vmatprep.mubr.msk.bf16.mxu0 %vm3639_vm2, %v3638_v8 }
 0x883   : > { %3432 = vmatmul.mubr.msk.bf16.vlgmr.msra.gmra.mxu1 %vm1768_vm6, %v1888_v17  ;;  %3461 = vmatprep.subr.bf16.mxu0 %v3638_v8 }
 0x884   : > { %3448 = vmatpush3.bf16.msra.mxu1 %v3571_v16  ;;  %3455 = vmatprep.mubr.msk.bf16.mxu1 %vm3639_vm2, %v3638_v8 }
 0x885   : > { %3449 = vmatprep.subr.bf16.mxu1 %v3638_v8 }
 0x886   : > { %3462 = vmatpush3.bf16.msra.mxu0 %v3572_v18 }
 0x887   : > { %3463 = vmatprep.subr.bf16.mxu0 %v3638_v8 }
 0x888   : > { %3450 = vmatpush3.bf16.msra.mxu1 %v3573_v19 }
 0x889   : > { %3451 = vmatprep.subr.bf16.mxu1 %v3638_v8 }
 0x88a   : > { %3464 = vmatpush3.bf16.msra.mxu0 %v3574_v20 }
 0x88b   : > { %3465 = vmatprep.subr.bf16.mxu0 %v3638_v8 }
 0x88c   : > { %3452 = vmatpush3.bf16.msra.mxu1 %v3575_v21 }
 0x88d   : > { %3453 = vmatprep.subr.bf16.mxu1 %v3638_v8 }
 0x88e   : > { %3466 = vmatpush3.bf16.msra.mxu0 %v3576_v22 }
 0x88f   : > { %3483 = vmatprep.subr.bf16.mxu0 %v3638_v8 }
 0x890   : > { %3454 = vmatpush3.bf16.msra.mxu1 %v3577_v24 }
 0x891   : > { %3468 = vmatmul.mubr.msk.bf16.vlgmr.msra.gmra.mxu0 %vm1768_vm6, %v2122_v26  ;;  %3471 = vmatprep.subr.bf16.mxu1 %v3638_v8 }
 0x892   : > { %3484 = vmatpush3.bf16.msra.mxu0 %v3578_v25  ;;  %3491 = vmatprep.mubr.msk.bf16.mxu0 %vm3639_vm2, %v3638_v8 }
 0x893   : > { %3456 = vmatmul.mubr.msk.bf16.vlgmr.msra.gmra.mxu1 %vm1768_vm6, %v2044_v28  ;;  %3485 = vmatprep.subr.bf16.mxu0 %v3638_v8 }
 0x894   : > { %3472 = vmatpush3.bf16.msra.mxu1 %v3579_v27  ;;  %3479 = vmatprep.mubr.msk.bf16.mxu1 %vm3639_vm2, %v3638_v8 }
 0x895   : > { %3473 = vmatprep.subr.bf16.mxu1 %v3638_v8 }
 0x896   : > { %3486 = vmatpush3.bf16.msra.mxu0 %v3580_v29 }
 0x897   : > { %3487 = vmatprep.subr.bf16.mxu0 %v3638_v8 }
 0x898   : > { %3474 = vmatpush3.bf16.msra.mxu1 %v3581_v30 }
 0x899   : > { %3475 = vmatprep.subr.bf16.mxu1 %v3638_v8 }
 0x89a   : > { %3488 = vmatpush3.bf16.msra.mxu0 %v3582_v31 }
 0x89b   : > { %3489 = vmatprep.subr.bf16.mxu0 %v3638_v8 }
 0x89c   : > { %3476 = vmatpush3.bf16.msra.mxu1 %v3583_v32 }
 0x89d   : > { %3477 = vmatprep.subr.bf16.mxu1 %v3638_v8 }
 0x89e   : > { %3490 = vmatpush3.bf16.msra.mxu0 %v3584_v40 }
 0x89f   : > { %2539 = vmatprep.subr.bf16.mxu0 %v3592_v39 }
 0x8a0   : > { %3478 = vmatpush3.bf16.msra.mxu1 %v3585_v43 }
 0x8a1   : > { %3492 = vmatmul.mubr.msk.bf16.vlgmr.msra.gmra.mxu0 %vm1768_vm6, %v2278_v46  ;;  %3495 = vmatprep.subr.bf16.mxu1 %v3638_v8 }
 0x8a2   : > { %2571 = vmatprep.mubr.bf16.mxu0 %v3640_v23  ;;  %v3589_v23 = vld [vmem:[%s4299_s8 + $0x100] sm:$0xff]   ;;  %2540 = vmatpush1.bf16.msra.mxu0 %v3590_v38 }
 0x8a3   : > { %3480 = vmatmul.mubr.msk.bf16.vlgmr.msra.gmra.mxu1 %vm1768_vm6, %v2200_v34  ;;  %2541 = vmatprep.subr.bf16.mxu0 %v3595_v41 }
 0x8a4   : > { %3496 = vmatpush3.bf16.msra.mxu1 %v3586_v33  ;;  %3503 = vmatprep.mubr.msk.bf16.mxu1 %vm3639_vm2, %v3638_v8 }
 0x8a5   : > { %3497 = vmatprep.subr.bf16.mxu1 %v3638_v8 }
 0x8a8   : > { %3498 = vmatpush3.bf16.msra.mxu1 %v3587_v35 }
 0x8a9   : > { %3499 = vmatprep.subr.bf16.mxu1 %v3638_v8 }
 0x8ac   : > { %3500 = vmatpush3.bf16.msra.mxu1 %v3588_v36 }
 0x8ad   : > { %3501 = vmatprep.subr.bf16.mxu1 %v3638_v8  ;;  %v3593_v8 = vld [vmem:[%s4302_s11 + $0x60] ss:$8 sps:$4 sm:$0xff]  }
 0x8ae   : > { %2542 = vmatpush1.bf16.msra.mxu0 %v3593_v8 }
 0x8af   : > { %2543 = vmatprep.subr.bf16.mxu0 %v3598_v42  ;;  %v2425_v42 = vld [vmem:[%s4300_s9] sm:$0x1] }
 0x8b0   : > { %3502 = vmatpush3.bf16.msra.mxu1 %v3589_v23 }
 0x8b1   : > { %3183 = vmatprep.subr.bf16.mxu1 %v3614_v56  ;;  %v3628_v56 = vld [vmem:[%s4304_s13 + $0x40] sm:$0xff]  }
 0x8b2   : > { %2544 = vmatpush1.bf16.msra.mxu0 %v3596_v44 }
 0x8b3   : > { %3504 = vmatmul.mubr.msk.bf16.vlgmr.msra.gmra.mxu1 %vm1768_vm6, %v2356_v37  ;;  %2545 = vmatprep.subr.bf16.mxu0 %v3601_v45  ;;  %v2427_v45 = vld [vmem:[%s4301_s10] sm:$0x1] }
 0x8b4   : > { %3184 = vmatpush3.bf16.msra.mxu1 %v3615_v57  ;;  %v3629_v57 = vld [vmem:[%s4304_s13] sm:$0xff]  }
 0x8b5   : > { %3185 = vmatprep.subr.bf16.mxu1 %v3616_v58  ;;  %v2529_v58 = vlaneseq }
 0x8b6   : > { %2546 = vmatpush1.bf16.msra.mxu0 %v3599_v47 }
 0x8b7   : > { %2547 = vmatprep.subr.bf16.mxu0 %v3604_v48 }
 0x8b8   : > { %3186 = vmatpush3.bf16.msra.mxu1 %v3617_v59  ;;  %v2530_v59 = vshrl.u32 %v2529_v58, 7 }
 0x8b9   : > { %3187 = vmatprep.subr.bf16.mxu1 %v3618_v60 }
 0x8ba   : > { %2548 = vmatpush1.bf16.msra.mxu0 %v3602_v49  ;;  %v2531_v60 = vsub.s32 0, %v2530_v59 }
 0x8bb   : > { %2549 = vmatprep.subr.bf16.mxu0 %v3607_v50 }
 0x8bc   : > { %3188 = vmatpush3.bf16.msra.mxu1 %v3619_v61  ;;  %v2447_v61 = vld [vmem:[%s4303_s12] sm:$0x3] }
 0x8bd   : > { %3189 = vmatprep.subr.bf16.mxu1 %v3620_v62  ;;  %v2535_v62 = vsub.s32 1, %v2530_v59 }
 0x8be   : > { %2550 = vmatpush1.bf16.msra.mxu0 %v3605_v51 }
 0x8bf   : > { %2551 = vmatprep.subr.bf16.mxu0 %v3610_v52 }
 0x8c0   : > { %3190 = vmatpush3.bf16.msra.mxu1 %v3621_v63  ;;  %v2532_v63 = vrot.slane %v2447_v61, %v2531_v60 }
 0x8c1   : > { %3191 = vmatprep.subr.bf16.mxu1 %v3622_v0  ;;  %v2536_v0 = vrot.slane %v2447_v61, %v2535_v62 }
 0x8c2   : > { %2552 = vmatpush1.bf16.msra.mxu0 %v3608_v53 }
 0x8c3   : > { %2553 = vmatprep.subr.bf16.mxu0 %v3613_v54  ;;  %v3626_v54 = vld [vmem:[%s4304_s13 + $0x48] sm:$0xff]  }
 0x8c4   : > { %3192 = vmatpush3.bf16.msra.mxu1 %v3623_v1 }
 0x8c5   : > { %3193 = vmatprep.subr.bf16.mxu1 %v3624_v2 }
 0x8c6   : > { %2554 = vmatpush1.bf16.msra.mxu0 %v3611_v55  ;;  %v3627_v55 = vld [vmem:[%s4304_s13 + $0x8] sm:$0xff]  }
 0x8c8   : > { %3194 = vmatpush3.bf16.msra.mxu1 %v3625_v3 }
 0x8c9   : > { %3195 = vmatprep.subr.bf16.mxu1 %v3626_v54 }
 0x8cc   : > { %3196 = vmatpush3.bf16.msra.mxu1 %v3627_v55 }
 0x8cd   : > { %3197 = vmatprep.subr.bf16.mxu1 %v3628_v56 }
 0x8d0   : > { %3198 = vmatpush3.bf16.msra.mxu1 %v3629_v57 }
 0x931   : > { %v1872_v4 = vpop.f32.mrf.mxu0 }
 0x933   : > { %v1806_v5 = vpop.f32.mrf.mxu1  ;;  %v3421_v6 = vpop.f32.mrf.mxu0 }
 0x934   : > { %v1873_v30 = vadd.f32 %v1872_v4, %v1806_v5 }
 0x935   : > { %v3409_v7 = vpop.f32.mrf.mxu1  ;;  %v1875_v9 = vpop.f32.mrf.mxu0 }
 0x937   : > { %v1809_v10 = vpop.f32.mrf.mxu1  ;;  %v3422_v11 = vpop.f32.mrf.mxu0 }
 0x939   : > { %v3410_v12 = vpop.f32.mrf.mxu1 }
 0x941   : > { %v2028_v13 = vpop.f32.mrf.mxu0 }
 0x943   : > { %v1950_v14 = vpop.f32.mrf.mxu1  ;;  %v3445_v15 = vpop.f32.mrf.mxu0 }
 0x944   : > { %v1956_v32 = vadd.f32 %v1950_v14, %v1873_v30 }
 0x945   : > { %v3433_v16 = vpop.f32.mrf.mxu1  ;;  %v2031_v17 = vpop.f32.mrf.mxu0 }
 0x946   : > { %v2034_v34 = vadd.f32 %v2028_v13, %v1956_v32  ;;  %v2616_v13 = vld [vmem:[%s4305_s14] sm:$0x1] }
 0x947   : > { %v1953_v18 = vpop.f32.mrf.mxu1  ;;  %v3446_v19 = vpop.f32.mrf.mxu0 }
 0x949   : > { %v3434_v20 = vpop.f32.mrf.mxu1 }
 0x951   : > { %v2184_v21 = vpop.f32.mrf.mxu0 }
 0x953   : > { %v2106_v22 = vpop.f32.mrf.mxu1  ;;  %v3469_v24 = vpop.f32.mrf.mxu0 }
 0x954   : > { %v2112_v23 = vadd.f32 %v2106_v22, %v2034_v34 }
 0x955   : > { %v3457_v25 = vpop.f32.mrf.mxu1  ;;  %v2187_v26 = vpop.f32.mrf.mxu0 }
 0x956   : > { %v2190_v38 = vadd.f32 %v2184_v21, %v2112_v23 }
 0x957   : > { %v2109_v27 = vpop.f32.mrf.mxu1  ;;  %v3470_v28 = vpop.f32.mrf.mxu0 }
 0x959   : > { %v3458_v29 = vpop.f32.mrf.mxu1 }
 0x961   : > { %v2340_v31 = vpop.f32.mrf.mxu0 }
 0x963   : > { %v2262_v40 = vpop.f32.mrf.mxu1  ;;  %v3493_v43 = vpop.f32.mrf.mxu0 }
 0x964   : > { %v2268_v39 = vadd.f32 %v2262_v40, %v2190_v38 }
 0x965   : > { %v3481_v46 = vpop.f32.mrf.mxu1  ;;  %v2343_v33 = vpop.f32.mrf.mxu0 }
 0x966   : > { %v2346_v41 = vadd.f32 %v2340_v31, %v2268_v39 }
 0x967   : > { %v2265_v35 = vpop.f32.mrf.mxu1  ;;  %v3494_v36 = vpop.f32.mrf.mxu0 }
 0x969   : > { %v3482_v37 = vpop.f32.mrf.mxu1 }
 0x973   : > { %v2418_v8 = vpop.f32.mrf.mxu1 }
 0x974   : > { %v2424_v44 = vadd.f32 %v2418_v8, %v2346_v41 }
 0x975   : > { %v3505_v47 = vpop.f32.mrf.mxu1 }
 0x976   : > { %v2426_v48 = vmul.f32 %v2425_v42, %v2424_v44 }
 0x977   : > { %v2421_v49 = vpop.f32.mrf.mxu1 }
 0x978   : > { %v2428_v50 = vadd.f32 %v2427_v45, %v2426_v48 }
 0x979   : > { %v3506_v51 = vpop.f32.mrf.mxu1 }
 0x97a   : > { %v2429_v52 = vmax.f32 %v2428_v50, 0.0 }
 0x97c   : > { %v2430_v53 = vpack.c.bf16 %v2429_v52, %v2429_v52 }
 0x97e   : > { %2572 = vmatmul.mubr.bf16.vlgmr.msra.gmra.mxu0 %v2430_v53 }
 0xa3e   : > { %v2573_v1 = vpop.f32.mrf.mxu0 }
 0xa3f   : > { %v2574_v2 = vadd.f32 %v2573_v1, %v2532_v63 }
 0xa40   : > { %v2575_v3 = vpop.f32.mrf.mxu0 }
 0xa41   : > { %v2576_v4 = vadd.f32 %v2575_v3, %v2536_v0  ;;  %v2580_v5 = vmax.f32 %v2574_v2, 0.0 }
 0xa42   : > { %v2577_v6 = vpop.f32.mrf.mxu0 }
 0xa43   : > { %v2581_v7 = vmax.f32 %v2576_v4, 0.0  ;;  %v2582_v11 = vpack.c.bf16 %v2580_v5, %v2580_v5 }
 0xa44   : > { %v2578_v9 = vpop.f32.mrf.mxu0 }
 0xa45   : > { %v2583_v10 = vpack.c.bf16 %v2581_v7, %v2581_v7 }
 0xa47   : > { %2745 = vmatprep.mubr.bf16.mxu1 %v2583_v10 }
 0xa48   : > { %2746 = vmatmul.mubr.bf16.vlgmr.msra.gmra.mxu1 %v2582_v11 }
 0xb08   : > { %v3199_v12 = vpop.f32.mrf.mxu1 }
 0xb0a   : > { %v3200_v14 = vpop.f32.mrf.mxu1 }
 0xb0b   : > { %v3201_v15 = vadd.f32 %v3200_v14, %v3199_v12 }
 0xb0c   : > { %v3202_v16 = vpop.f32.mrf.mxu1 }
 0xb0d   : > { %v2748_v17 = vadd.f32 %v3201_v15, %v2616_v13 }
 0xb0e   : > { %v3203_v18 = vpop.f32.mrf.mxu1 }
 0xb0f   : > { %2754 = vst.msk [vmem:[%s490_s30] sm:$0x1] %vm2753_vm7, %v2748_v17 }
 0xb10 PF: > { %s25_s18 = sadd.s32 1, %s3636_s18  }
 0xb11   : > { %p22_p4 = scmp.ge.s32.totalorder %s25_s18, 4  }
 0xb13   :  { %24 = sbr.rel (!%p22_p4) target bundleno = 1 (0x1), region = 134 }

</bundles_post_ra>
